<compile_context>
chip_gen: v5e
topology: v5e:2x2
jax: 0.10.0
libtpu: 0.0.40
codegen_flags: <defaults>
</compile_context>

<pallas_src>
import functools

import jax
import jax.numpy as jnp
from jax.experimental import pallas as pl
from jax.experimental.pallas import tpu as pltpu


def _attn_prop_kernel(*refs, num_heads, fuse_kv, mm_dtype):
    if fuse_kv:
        (x_ref, s_ref, wq_ref, bq_ref, wkv_ref, bkv_ref,
         wm_ref, bm_ref, w1a_ref, w1b_ref, b1_ref, w2_ref, b2_ref, o_ref) = refs
    else:
        (x_ref, s_ref, wq_ref, bq_ref, wk_ref, bk_ref, wv_ref, bv_ref,
         wm_ref, bm_ref, w1a_ref, w1b_ref, b1_ref, w2_ref, b2_ref, o_ref) = refs

    bt, n, c = x_ref.shape            # token-major tile: (batch_tile, N, C)
    _, m, _ = s_ref.shape             # (batch_tile, M, C)
    h = num_heads
    d = c // h
    f32 = jnp.float32

    # Token-major inputs: merging the leading (bt, n) axes is a free reshape.
    x_mm = x_ref[...].reshape(bt * n, c).astype(mm_dtype)
    s_mm = s_ref[...].reshape(bt * m, c).astype(mm_dtype)

    # ---- q / k / v projections (1x1 convs == channel matmuls on the lane axis).
    #      1/sqrt(d) is already folded into wq/bq on the host. ----
    q2 = jnp.dot(x_mm, wq_ref[...], preferred_element_type=f32) + bq_ref[...]
    if fuse_kv:                       # only when C % 128 == 0: lane slice is free
        kv2 = jnp.dot(s_mm, wkv_ref[...], preferred_element_type=f32) + bkv_ref[...]
        k2 = kv2[:, :c]
        v2 = kv2[:, c:]
    else:
        k2 = jnp.dot(s_mm, wk_ref[...], preferred_element_type=f32) + bk_ref[...]
        v2 = jnp.dot(s_mm, wv_ref[...], preferred_element_type=f32) + bv_ref[...]

    # ---- multi-head attention: all heads in one batched einsum pair.  Channels
    #      are head-major (weights permuted on the host) so the head split is a
    #      lane reshape + one (token <-> head) sublane swap. ----
    def to_heads(t2, length):
        t4 = jnp.transpose(t2.reshape(bt, length, h, d), (0, 2, 1, 3))
        return t4.reshape(bt * h, length, d)

    q4 = to_heads(q2, n)              # (bt*h, n, d)
    k4 = to_heads(k2, m)              # (bt*h, m, d)
    v4 = to_heads(v2, m)              # (bt*h, m, d)

    scores = jnp.einsum('bnd,bmd->bnm', q4.astype(mm_dtype), k4.astype(mm_dtype),
                        preferred_element_type=f32)               # (bt*h, n, m)
    scores = scores - jnp.max(scores, axis=-1, keepdims=True)
    e = jnp.exp(scores)
    denom = jnp.sum(e, axis=-1, keepdims=True)
    r = pl.reciprocal(denom, approx=True)                         # EUP slot
    r = r * (2.0 - denom * r)                                     # Newton -> ~f32 accuracy
    prob = e * r

    attn4 = jnp.einsum('bnm,bmd->bnd', prob.astype(mm_dtype), v4.astype(mm_dtype),
                       preferred_element_type=f32)                # (bt*h, n, d)
    attn2 = jnp.transpose(attn4.reshape(bt, h, n, d), (0, 2, 1, 3)).reshape(bt * n, c)

    # ---- merge conv (wm columns permuted to head-major on the host) ----
    message2 = jnp.dot(attn2.astype(mm_dtype), wm_ref[...],
                       preferred_element_type=f32) + bm_ref[...]

    # ---- MLP: conv(2C->2C) [inference BatchNorm folded] + ReLU + conv(2C->C);
    #      the channel concat [x, message] is folded into two matmuls. ----
    h1 = (jnp.dot(x_mm, w1a_ref[...], preferred_element_type=f32)
          + jnp.dot(message2.astype(mm_dtype), w1b_ref[...], preferred_element_type=f32)
          + b1_ref[...])
    h1 = jnp.maximum(h1, 0.0)
    out2 = jnp.dot(h1.astype(mm_dtype), w2_ref[...], preferred_element_type=f32) + b2_ref[...]

    # Lane-dense writeback: last (lane) dim is C.
    o_ref[...] = out2.reshape(bt, n, c).astype(o_ref.dtype)


def attentional_propagation_forward(x, source, params, *, num_heads,
                                    batch_tile=None, matmul_dtype=jnp.bfloat16):
    """x: (B, C, N), source: (B, C, M) float32 (PyTorch NCW convention)."""
    B, C, N = x.shape
    _, _, M = source.shape
    H = num_heads
    assert C % H == 0
    d = C // H
    f32 = jnp.float32

    if batch_tile is None:
        # Pack several batch elements per grid step (amortize the ~0.35us/step
        # pipeline overhead, fill MXU rows) but keep >= 2 "parallel" grid steps
        # when B >= 2 so a 2-TensorCore chip (v7x) can shard the batch axis.
        # TODO(synk): on single-TC chips (v5e/v6e) prefer one grid step when the
        #             whole batch fits the VMEM budget.
        target = max(1, B // 2)
        batch_tile = max(bt for bt in range(1, min(8, target) + 1) if B % bt == 0)
    assert B % batch_tile == 0
    grid = (B // batch_tile,)

    # --- host-side parameter preparation (tiny, one-off) ---
    # Head-major channel permutation: kernel channel h*d+dd == PyTorch channel dd*H+h.
    perm = (jnp.arange(H)[:, None] + jnp.arange(d)[None, :] * H).reshape(-1)
    inv_sqrt_d = 1.0 / (d ** 0.5)

    wq_t = (params['wq'][perm, :].T * inv_sqrt_d).astype(matmul_dtype)   # (C, C), 1/sqrt(d) folded
    bq = (params['bq'][perm] * inv_sqrt_d)[None, :].astype(f32)          # (1, C)
    wk_t = params['wk'][perm, :].T                                       # (C, C)
    bk = params['bk'][perm][None, :].astype(f32)
    wv_t = params['wv'][perm, :].T
    bv = params['bv'][perm][None, :].astype(f32)
    wm_t = params['wm'][:, perm].T.astype(matmul_dtype)                  # (C, C)
    bm = params['bm'][None, :].astype(f32)

    # Fold inference-mode BatchNorm into the first MLP conv.
    bn_scale = params['bn_gamma'] / jnp.sqrt(params['bn_var'] + params['bn_eps'])
    bn_shift = params['bn_beta'] - params['bn_mean'] * bn_scale
    w1_eff = params['w1'] * bn_scale[:, None]                            # (2C, 2C)
    b1_eff = (params['b1'] * bn_scale + bn_shift)[None, :].astype(f32)   # (1, 2C)
    w1a_t = w1_eff[:, :C].T.astype(matmul_dtype)                         # (C, 2C) acts on x
    w1b_t = w1_eff[:, C:].T.astype(matmul_dtype)                         # (C, 2C) acts on message
    w2_t = params['w2'].T.astype(matmul_dtype)                           # (2C, C)
    b2 = params['b2'][None, :].astype(f32)                               # (1, C)

    # Fuse the k/v projections only when C is a lane-tile (128) boundary.
    fuse_kv = (C % 128 == 0)
    if fuse_kv:
        kv_args = (jnp.concatenate([wk_t, wv_t], axis=1).astype(matmul_dtype),   # (C, 2C)
                   jnp.concatenate([bk, bv], axis=1))                            # (1, 2C)
    else:
        kv_args = (wk_t.astype(matmul_dtype), bk, wv_t.astype(matmul_dtype), bv)

    # Token-major (lane = C) inputs and output: wrapper-side layout plumbing only.
    x_t = jnp.transpose(x, (0, 2, 1))         # (B, N, C)
    s_t = jnp.transpose(source, (0, 2, 1))    # (B, M, C)

    weight_args = (wq_t, bq) + kv_args + (wm_t, bm, w1a_t, w1b_t, b1_eff, w2_t, b2)

    def whole(arr):
        zeros = (0,) * arr.ndim
        # TODO(synk): pipeline_mode=pl.Buffered(1) would halve the resident VMEM of
        #             these grid-constant weight blocks; left at the default here.
        return pl.BlockSpec(arr.shape, lambda b: zeros)

    kernel = functools.partial(_attn_prop_kernel, num_heads=H, fuse_kv=fuse_kv,
                               mm_dtype=matmul_dtype)

    out_t = pl.pallas_call(
        kernel,
        out_shape=jax.ShapeDtypeStruct((B, N, C), jnp.float32),
        grid_spec=pltpu.PrefetchScalarGridSpec(
            num_scalar_prefetch=0,
            grid=grid,
            in_specs=[
                pl.BlockSpec((batch_tile, N, C), lambda b: (b, 0, 0)),
                pl.BlockSpec((batch_tile, M, C), lambda b: (b, 0, 0)),
            ] + [whole(a) for a in weight_args],
            out_specs=pl.BlockSpec((batch_tile, N, C), lambda b: (b, 0, 0)),
        ),
        compiler_params=pltpu.CompilerParams(
            # TODO(synk): on v7x verify the batch axis actually shards across both
            #             TensorCores; switch to CORE_PARALLEL semantics if not.
            dimension_semantics=("parallel",),
            vmem_limit_bytes=48 * 1024 * 1024,
        ),
    )(x_t, s_t, *weight_args)

    return jnp.transpose(out_t, (0, 2, 1))    # back to the module's (B, C, N) layout


def attentional_propagation_ref(x, source, params, *, num_heads):
    """Pure-JAX reference mirroring the PyTorch module (inference-mode BN)."""
    B, C, N = x.shape
    d = C // num_heads
    hp = jax.lax.Precision.HIGHEST

    def conv1x1(w, b, inp):
        return jnp.einsum('oc,bcl->bol', w, inp, precision=hp) + b[None, :, None]

    q = conv1x1(params['wq'], params['bq'], x)
    k = conv1x1(params['wk'], params['bk'], source)
    v = conv1x1(params['wv'], params['bv'], source)

    q = q.reshape(B, d, num_heads, N)
    k = k.reshape(B, d, num_heads, -1)
    v = v.reshape(B, d, num_heads, -1)

    scores = jnp.einsum('bdhn,bdhm->bhnm', q, k, precision=hp) / (d ** 0.5)
    prob = jax.nn.softmax(scores, axis=-1)
    msg = jnp.einsum('bhnm,bdhm->bdhn', prob, v, precision=hp).reshape(B, C, N)
    message = conv1x1(params['wm'], params['bm'], msg)

    cat = jnp.concatenate([x, message], axis=1)
    h1 = conv1x1(params['w1'], params['b1'], cat)
    scale = params['bn_gamma'] / jnp.sqrt(params['bn_var'] + params['bn_eps'])
    shift = params['bn_beta'] - params['bn_mean'] * scale
    h1 = h1 * scale[None, :, None] + shift[None, :, None]
    h1 = jnp.maximum(h1, 0.0)
    return conv1x1(params['w2'], params['b2'], h1)


if __name__ == "__main__":
    key = jax.random.PRNGKey(0)
    B, C, N, M, H = 2, 32, 16, 24, 4      # batch, feature_dim, x tokens, source tokens, heads

    def conv_init(k, c_out, c_in):
        kw, kb = jax.random.split(k)
        bound = 1.0 / (c_in ** 0.5)
        w = jax.random.uniform(kw, (c_out, c_in), jnp.float32, -bound, bound)
        b = jax.random.uniform(kb, (c_out,), jnp.float32, -bound, bound)
        return w, b

    keys = jax.random.split(key, 12)
    wq, bq = conv_init(keys[0], C, C)
    wk, bk = conv_init(keys[1], C, C)
    wv, bv = conv_init(keys[2], C, C)
    wm, bm = conv_init(keys[3], C, C)
    w1, b1 = conv_init(keys[4], 2 * C, 2 * C)
    w2, _ = conv_init(keys[5], C, 2 * C)
    b2 = jnp.zeros((C,), jnp.float32)      # nn.init.constant_(self.mlp[-1].bias, 0.0)

    bn_gamma = 1.0 + 0.1 * jax.random.normal(keys[6], (2 * C,), dtype=jnp.float32)
    bn_beta = 0.1 * jax.random.normal(keys[7], (2 * C,), dtype=jnp.float32)
    bn_mean = 0.1 * jax.random.normal(keys[8], (2 * C,), dtype=jnp.float32)
    bn_var = 1.0 + 0.1 * jax.random.uniform(keys[9], (2 * C,), dtype=jnp.float32)

    params = dict(wq=wq, bq=bq, wk=wk, bk=bk, wv=wv, bv=bv, wm=wm, bm=bm,
                  w1=w1, b1=b1, w2=w2, b2=b2,
                  bn_gamma=bn_gamma, bn_beta=bn_beta,
                  bn_mean=bn_mean, bn_var=bn_var, bn_eps=1e-5)

    x = jax.random.normal(keys[10], (B, C, N), dtype=jnp.float32)
    source = jax.random.normal(keys[11], (B, C, M), dtype=jnp.float32)

    ref = attentional_propagation_ref(x, source, params, num_heads=H)

    # f32-matmul path: tight check against the pure-JAX reference.
    out_f32 = jax.block_until_ready(
        attentional_propagation_forward(x, source, params, num_heads=H,
                                        matmul_dtype=jnp.float32))
    assert out_f32.shape == (B, C, N), out_f32.shape
    err_f32 = jnp.max(jnp.abs(out_f32 - ref))
    assert jnp.allclose(out_f32, ref, atol=1e-3, rtol=1e-3), f"f32 max abs err {err_f32}"

    # bf16-matmul path (default: matches native MXU precision): loose sanity check.
    out_bf16 = jax.block_until_ready(
        attentional_propagation_forward(x, source, params, num_heads=H))
    assert out_bf16.shape == (B, C, N), out_bf16.shape
    err_bf16 = jnp.max(jnp.abs(out_bf16 - ref))
    assert jnp.allclose(out_bf16, ref, atol=1.5e-1, rtol=1e-1), f"bf16 max abs err {err_bf16}"

    print("KERNEL_OK")
</pallas_src>

<mosaic_0001>
module attributes {stable_mosaic.version = 11 : i64} {
  func.func @_attn_prop_kernel(%arg0: i32, %arg1: memref<1x16x32xf32, #tpu.memory_space<vmem>>, %arg2: memref<1x24x32xf32, #tpu.memory_space<vmem>>, %arg3: memref<32x32xf32, #tpu.memory_space<vmem>>, %arg4: memref<1x32xf32, #tpu.memory_space<vmem>>, %arg5: memref<32x32xf32, #tpu.memory_space<vmem>>, %arg6: memref<1x32xf32, #tpu.memory_space<vmem>>, %arg7: memref<32x32xf32, #tpu.memory_space<vmem>>, %arg8: memref<1x32xf32, #tpu.memory_space<vmem>>, %arg9: memref<32x32xf32, #tpu.memory_space<vmem>>, %arg10: memref<1x32xf32, #tpu.memory_space<vmem>>, %arg11: memref<32x64xf32, #tpu.memory_space<vmem>>, %arg12: memref<32x64xf32, #tpu.memory_space<vmem>>, %arg13: memref<1x64xf32, #tpu.memory_space<vmem>>, %arg14: memref<64x32xf32, #tpu.memory_space<vmem>>, %arg15: memref<1x32xf32, #tpu.memory_space<vmem>>, %arg16: memref<1x16x32xf32, #tpu.memory_space<vmem>>) attributes {dimension_semantics = [#tpu.dimension_semantics<parallel>], iteration_bounds = array<i64: 2>, scalar_prefetch = 0 : i64, scratch_operands = 0 : i64, tpu.core_type = #tpu.core_type<tc>, window_params = [{transform_indices = @transform_0, window_bounds = array<i64: 1, 16, 32>}, {transform_indices = @transform_1, window_bounds = array<i64: 1, 24, 32>}, {pipeline_mode = #tpu.pipeline_mode<synchronous>, transform_indices = @transform_2, window_bounds = array<i64: 32, 32>}, {pipeline_mode = #tpu.pipeline_mode<synchronous>, transform_indices = @transform_3, window_bounds = array<i64: 1, 32>}, {pipeline_mode = #tpu.pipeline_mode<synchronous>, transform_indices = @transform_4, window_bounds = array<i64: 32, 32>}, {pipeline_mode = #tpu.pipeline_mode<synchronous>, transform_indices = @transform_5, window_bounds = array<i64: 1, 32>}, {pipeline_mode = #tpu.pipeline_mode<synchronous>, transform_indices = @transform_6, window_bounds = array<i64: 32, 32>}, {pipeline_mode = #tpu.pipeline_mode<synchronous>, transform_indices = @transform_7, window_bounds = array<i64: 1, 32>}, {pipeline_mode = #tpu.pipeline_mode<synchronous>, transform_indices = @transform_8, window_bounds = array<i64: 32, 32>}, {pipeline_mode = #tpu.pipeline_mode<synchronous>, transform_indices = @transform_9, window_bounds = array<i64: 1, 32>}, {pipeline_mode = #tpu.pipeline_mode<synchronous>, transform_indices = @transform_10, window_bounds = array<i64: 32, 64>}, {pipeline_mode = #tpu.pipeline_mode<synchronous>, transform_indices = @transform_11, window_bounds = array<i64: 32, 64>}, {pipeline_mode = #tpu.pipeline_mode<synchronous>, transform_indices = @transform_12, window_bounds = array<i64: 1, 64>}, {pipeline_mode = #tpu.pipeline_mode<synchronous>, transform_indices = @transform_13, window_bounds = array<i64: 64, 32>}, {pipeline_mode = #tpu.pipeline_mode<synchronous>, transform_indices = @transform_14, window_bounds = array<i64: 1, 32>}, {transform_indices = @transform_15, window_bounds = array<i64: 1, 16, 32>}]} {
    %c0 = arith.constant 0 : index
    %c0_0 = arith.constant 0 : index
    %c0_1 = arith.constant 0 : index
    %0 = vector.load %arg1[%c0, %c0_0, %c0_1] : memref<1x16x32xf32, #tpu.memory_space<vmem>>, vector<1x16x32xf32>
    %1 = vector.shape_cast %0 : vector<1x16x32xf32> to vector<16x32xf32>
    %c0_2 = arith.constant 0 : index
    %c0_3 = arith.constant 0 : index
    %c0_4 = arith.constant 0 : index
    %2 = vector.load %arg2[%c0_2, %c0_3, %c0_4] : memref<1x24x32xf32, #tpu.memory_space<vmem>>, vector<1x24x32xf32>
    %3 = vector.shape_cast %2 : vector<1x24x32xf32> to vector<24x32xf32>
    %c0_5 = arith.constant 0 : index
    %c0_6 = arith.constant 0 : index
    %4 = vector.load %arg3[%c0_5, %c0_6] : memref<32x32xf32, #tpu.memory_space<vmem>>, vector<32x32xf32>
    %cst = arith.constant dense<0.000000e+00> : vector<16x32xf32>
    %5 = tpu.matmul %1, %4, %cst {dimension_numbers = #tpu.dot_dimension_numbers<[1], [0], [0], [1], [0, 0, 1, 1], [], []>} : vector<16x32xf32>, vector<32x32xf32>, vector<16x32xf32> -> vector<16x32xf32>
    %c0_7 = arith.constant 0 : index
    %c0_8 = arith.constant 0 : index
    %6 = vector.load %arg4[%c0_7, %c0_8] : memref<1x32xf32, #tpu.memory_space<vmem>>, vector<1x32xf32>
    %7 = vector.broadcast %6 : vector<1x32xf32> to vector<16x32xf32>
    %8 = arith.addf %5, %7 : vector<16x32xf32>
    %c0_9 = arith.constant 0 : index
    %c0_10 = arith.constant 0 : index
    %9 = vector.load %arg5[%c0_9, %c0_10] : memref<32x32xf32, #tpu.memory_space<vmem>>, vector<32x32xf32>
    %cst_11 = arith.constant dense<0.000000e+00> : vector<24x32xf32>
    %10 = tpu.matmul %3, %9, %cst_11 {dimension_numbers = #tpu.dot_dimension_numbers<[1], [0], [0], [1], [0, 0, 1, 1], [], []>} : vector<24x32xf32>, vector<32x32xf32>, vector<24x32xf32> -> vector<24x32xf32>
    %c0_12 = arith.constant 0 : index
    %c0_13 = arith.constant 0 : index
    %11 = vector.load %arg6[%c0_12, %c0_13] : memref<1x32xf32, #tpu.memory_space<vmem>>, vector<1x32xf32>
    %12 = vector.broadcast %11 : vector<1x32xf32> to vector<24x32xf32>
    %13 = arith.addf %10, %12 : vector<24x32xf32>
    %c0_14 = arith.constant 0 : index
    %c0_15 = arith.constant 0 : index
    %14 = vector.load %arg7[%c0_14, %c0_15] : memref<32x32xf32, #tpu.memory_space<vmem>>, vector<32x32xf32>
    %cst_16 = arith.constant dense<0.000000e+00> : vector<24x32xf32>
    %15 = tpu.matmul %3, %14, %cst_16 {dimension_numbers = #tpu.dot_dimension_numbers<[1], [0], [0], [1], [0, 0, 1, 1], [], []>} : vector<24x32xf32>, vector<32x32xf32>, vector<24x32xf32> -> vector<24x32xf32>
    %c0_17 = arith.constant 0 : index
    %c0_18 = arith.constant 0 : index
    %16 = vector.load %arg8[%c0_17, %c0_18] : memref<1x32xf32, #tpu.memory_space<vmem>>, vector<1x32xf32>
    %17 = vector.broadcast %16 : vector<1x32xf32> to vector<24x32xf32>
    %18 = arith.addf %15, %17 : vector<24x32xf32>
    %19 = vector.shape_cast %8 : vector<16x32xf32> to vector<1x16x4x8xf32>
    %20 = tpu.transpose %19, [0, 2, 1, 3] : vector<1x16x4x8xf32> -> vector<1x4x16x8xf32>
    %21 = vector.shape_cast %20 : vector<1x4x16x8xf32> to vector<4x16x8xf32>
    %22 = vector.shape_cast %13 : vector<24x32xf32> to vector<1x24x4x8xf32>
    %23 = tpu.transpose %22, [0, 2, 1, 3] : vector<1x24x4x8xf32> -> vector<1x4x24x8xf32>
    %24 = vector.shape_cast %23 : vector<1x4x24x8xf32> to vector<4x24x8xf32>
    %25 = vector.shape_cast %18 : vector<24x32xf32> to vector<1x24x4x8xf32>
    %26 = tpu.transpose %25, [0, 2, 1, 3] : vector<1x24x4x8xf32> -> vector<1x4x24x8xf32>
    %27 = vector.shape_cast %26 : vector<1x4x24x8xf32> to vector<4x24x8xf32>
    "tpu.trace_start"() <{level = 10 : i32, message = "bnd,bmd->bnm"}> : () -> ()
    %cst_19 = arith.constant dense<0.000000e+00> : vector<4x16x24xf32>
    %28 = tpu.matmul %21, %24, %cst_19 {dimension_numbers = #tpu.dot_dimension_numbers<[2], [2], [1], [1], [0, 0, 0, 1, 1, 1], [0], [0]>} : vector<4x16x8xf32>, vector<4x24x8xf32>, vector<4x16x24xf32> -> vector<4x16x24xf32>
    "tpu.trace_stop"() : () -> ()
    %cst_20 = arith.constant dense<0xFF800000> : vector<4x16xf32>
    %29 = vector.multi_reduction <maximumf>, %28, %cst_20 [2] : vector<4x16x24xf32> to vector<4x16xf32>
    %30 = vector.shape_cast %29 : vector<4x16xf32> to vector<4x16x1xf32>
    %31 = vector.broadcast %30 : vector<4x16x1xf32> to vector<4x16x24xf32>
    %32 = arith.subf %28, %31 : vector<4x16x24xf32>
    %33 = math.exp %32 : vector<4x16x24xf32>
    %cst_21 = arith.constant dense<0.000000e+00> : vector<4x16xf32>
    %34 = vector.multi_reduction <add>, %33, %cst_21 [2] : vector<4x16x24xf32> to vector<4x16xf32>
    %35 = vector.shape_cast %34 : vector<4x16xf32> to vector<4x16x1xf32>
    %36 = tpu.reciprocal %35 {approx = true} : vector<4x16x1xf32> -> vector<4x16x1xf32>
    %37 = arith.mulf %35, %36 : vector<4x16x1xf32>
    %cst_22 = arith.constant 2.000000e+00 : f32
    %38 = vector.broadcast %cst_22 : f32 to vector<4x16x1xf32>
    %39 = arith.subf %38, %37 : vector<4x16x1xf32>
    %40 = arith.mulf %36, %39 : vector<4x16x1xf32>
    %41 = vector.broadcast %40 : vector<4x16x1xf32> to vector<4x16x24xf32>
    %42 = arith.mulf %33, %41 : vector<4x16x24xf32>
    "tpu.trace_start"() <{level = 10 : i32, message = "bnm,bmd->bnd"}> : () -> ()
    %cst_23 = arith.constant dense<0.000000e+00> : vector<4x16x8xf32>
    %43 = tpu.matmul %42, %27, %cst_23 {dimension_numbers = #tpu.dot_dimension_numbers<[2], [1], [1], [2], [0, 0, 0, 1, 1, 2], [0], [0]>} : vector<4x16x24xf32>, vector<4x24x8xf32>, vector<4x16x8xf32> -> vector<4x16x8xf32>
    "tpu.trace_stop"() : () -> ()
    %44 = vector.shape_cast %43 : vector<4x16x8xf32> to vector<1x4x16x8xf32>
    %45 = tpu.transpose %44, [0, 2, 1, 3] : vector<1x4x16x8xf32> -> vector<1x16x4x8xf32>
    %46 = vector.shape_cast %45 : vector<1x16x4x8xf32> to vector<16x32xf32>
    %c0_24 = arith.constant 0 : index
    %c0_25 = arith.constant 0 : index
    %47 = vector.load %arg9[%c0_24, %c0_25] : memref<32x32xf32, #tpu.memory_space<vmem>>, vector<32x32xf32>
    %cst_26 = arith.constant dense<0.000000e+00> : vector<16x32xf32>
    %48 = tpu.matmul %46, %47, %cst_26 {dimension_numbers = #tpu.dot_dimension_numbers<[1], [0], [0], [1], [0, 0, 1, 1], [], []>} : vector<16x32xf32>, vector<32x32xf32>, vector<16x32xf32> -> vector<16x32xf32>
    %c0_27 = arith.constant 0 : index
    %c0_28 = arith.constant 0 : index
    %49 = vector.load %arg10[%c0_27, %c0_28] : memref<1x32xf32, #tpu.memory_space<vmem>>, vector<1x32xf32>
    %50 = vector.broadcast %49 : vector<1x32xf32> to vector<16x32xf32>
    %51 = arith.addf %48, %50 : vector<16x32xf32>
    %c0_29 = arith.constant 0 : index
    %c0_30 = arith.constant 0 : index
    %52 = vector.load %arg11[%c0_29, %c0_30] : memref<32x64xf32, #tpu.memory_space<vmem>>, vector<32x64xf32>
    %cst_31 = arith.constant dense<0.000000e+00> : vector<16x64xf32>
    %53 = tpu.matmul %1, %52, %cst_31 {dimension_numbers = #tpu.dot_dimension_numbers<[1], [0], [0], [1], [0, 0, 1, 1], [], []>} : vector<16x32xf32>, vector<32x64xf32>, vector<16x64xf32> -> vector<16x64xf32>
    %c0_32 = arith.constant 0 : index
    %c0_33 = arith.constant 0 : index
    %54 = vector.load %arg12[%c0_32, %c0_33] : memref<32x64xf32, #tpu.memory_space<vmem>>, vector<32x64xf32>
    %cst_34 = arith.constant dense<0.000000e+00> : vector<16x64xf32>
    %55 = tpu.matmul %51, %54, %cst_34 {dimension_numbers = #tpu.dot_dimension_numbers<[1], [0], [0], [1], [0, 0, 1, 1], [], []>} : vector<16x32xf32>, vector<32x64xf32>, vector<16x64xf32> -> vector<16x64xf32>
    %56 = arith.addf %53, %55 : vector<16x64xf32>
    %c0_35 = arith.constant 0 : index
    %c0_36 = arith.constant 0 : index
    %57 = vector.load %arg13[%c0_35, %c0_36] : memref<1x64xf32, #tpu.memory_space<vmem>>, vector<1x64xf32>
    %58 = vector.broadcast %57 : vector<1x64xf32> to vector<16x64xf32>
    %59 = arith.addf %56, %58 : vector<16x64xf32>
    %cst_37 = arith.constant 0.000000e+00 : f32
    %60 = vector.broadcast %cst_37 : f32 to vector<16x64xf32>
    %61 = arith.maximumf %59, %60 : vector<16x64xf32>
    %c0_38 = arith.constant 0 : index
    %c0_39 = arith.constant 0 : index
    %62 = vector.load %arg14[%c0_38, %c0_39] : memref<64x32xf32, #tpu.memory_space<vmem>>, vector<64x32xf32>
    %cst_40 = arith.constant dense<0.000000e+00> : vector<16x32xf32>
    %63 = tpu.matmul %61, %62, %cst_40 {dimension_numbers = #tpu.dot_dimension_numbers<[1], [0], [0], [1], [0, 0, 1, 1], [], []>} : vector<16x64xf32>, vector<64x32xf32>, vector<16x32xf32> -> vector<16x32xf32>
    %c0_41 = arith.constant 0 : index
    %c0_42 = arith.constant 0 : index
    %64 = vector.load %arg15[%c0_41, %c0_42] : memref<1x32xf32, #tpu.memory_space<vmem>>, vector<1x32xf32>
    %65 = vector.broadcast %64 : vector<1x32xf32> to vector<16x32xf32>
    %66 = arith.addf %63, %65 : vector<16x32xf32>
    %67 = vector.shape_cast %66 : vector<16x32xf32> to vector<1x16x32xf32>
    %c0_43 = arith.constant 0 : index
    %c0_44 = arith.constant 0 : index
    %c0_45 = arith.constant 0 : index
    %68 = vector.load %arg16[%c0_43, %c0_44, %c0_45] : memref<1x16x32xf32, #tpu.memory_space<vmem>>, vector<1x16x32xf32>
    tpu.vector_store %arg16[%c0_43, %c0_44, %c0_45], %67 {strides = array<i32>} : memref<1x16x32xf32, #tpu.memory_space<vmem>>, vector<1x16x32xf32>,
    return
  }
  func.func @transform_0(%arg0: i32) -> (i32, i32, i32) {
    %c0_i32 = arith.constant 0 : i32
    %c0_i32_0 = arith.constant 0 : i32
    %c0_i32_1 = arith.constant 0 : i32
    return %arg0, %c0_i32, %c0_i32_0 : i32, i32, i32
  }
  func.func @transform_1(%arg0: i32) -> (i32, i32, i32) {
    %c0_i32 = arith.constant 0 : i32
    %c0_i32_0 = arith.constant 0 : i32
    %c0_i32_1 = arith.constant 0 : i32
    return %arg0, %c0_i32, %c0_i32_0 : i32, i32, i32
  }
  func.func @transform_2(%arg0: i32) -> (i32, i32) {
    %c0_i32 = arith.constant 0 : i32
    %c0_i32_0 = arith.constant 0 : i32
    %c0_i32_1 = arith.constant 0 : i32
    return %c0_i32, %c0_i32_0 : i32, i32
  }
  func.func @transform_3(%arg0: i32) -> (i32, i32) {
    %c0_i32 = arith.constant 0 : i32
    %c0_i32_0 = arith.constant 0 : i32
    %c0_i32_1 = arith.constant 0 : i32
    return %c0_i32, %c0_i32_0 : i32, i32
  }
  func.func @transform_4(%arg0: i32) -> (i32, i32) {
    %c0_i32 = arith.constant 0 : i32
    %c0_i32_0 = arith.constant 0 : i32
    %c0_i32_1 = arith.constant 0 : i32
    return %c0_i32, %c0_i32_0 : i32, i32
  }
  func.func @transform_5(%arg0: i32) -> (i32, i32) {
    %c0_i32 = arith.constant 0 : i32
    %c0_i32_0 = arith.constant 0 : i32
    %c0_i32_1 = arith.constant 0 : i32
    return %c0_i32, %c0_i32_0 : i32, i32
  }
  func.func @transform_6(%arg0: i32) -> (i32, i32) {
    %c0_i32 = arith.constant 0 : i32
    %c0_i32_0 = arith.constant 0 : i32
    %c0_i32_1 = arith.constant 0 : i32
    return %c0_i32, %c0_i32_0 : i32, i32
  }
  func.func @transform_7(%arg0: i32) -> (i32, i32) {
    %c0_i32 = arith.constant 0 : i32
    %c0_i32_0 = arith.constant 0 : i32
    %c0_i32_1 = arith.constant 0 : i32
    return %c0_i32, %c0_i32_0 : i32, i32
  }
  func.func @transform_8(%arg0: i32) -> (i32, i32) {
    %c0_i32 = arith.constant 0 : i32
    %c0_i32_0 = arith.constant 0 : i32
    %c0_i32_1 = arith.constant 0 : i32
    return %c0_i32, %c0_i32_0 : i32, i32
  }
  func.func @transform_9(%arg0: i32) -> (i32, i32) {
    %c0_i32 = arith.constant 0 : i32
    %c0_i32_0 = arith.constant 0 : i32
    %c0_i32_1 = arith.constant 0 : i32
    return %c0_i32, %c0_i32_0 : i32, i32
  }
  func.func @transform_10(%arg0: i32) -> (i32, i32) {
    %c0_i32 = arith.constant 0 : i32
    %c0_i32_0 = arith.constant 0 : i32
    %c0_i32_1 = arith.constant 0 : i32
    return %c0_i32, %c0_i32_0 : i32, i32
  }
  func.func @transform_11(%arg0: i32) -> (i32, i32) {
    %c0_i32 = arith.constant 0 : i32
    %c0_i32_0 = arith.constant 0 : i32
    %c0_i32_1 = arith.constant 0 : i32
    return %c0_i32, %c0_i32_0 : i32, i32
  }
  func.func @transform_12(%arg0: i32) -> (i32, i32) {
    %c0_i32 = arith.constant 0 : i32
    %c0_i32_0 = arith.constant 0 : i32
    %c0_i32_1 = arith.constant 0 : i32
    return %c0_i32, %c0_i32_0 : i32, i32
  }
  func.func @transform_13(%arg0: i32) -> (i32, i32) {
    %c0_i32 = arith.constant 0 : i32
    %c0_i32_0 = arith.constant 0 : i32
    %c0_i32_1 = arith.constant 0 : i32
    return %c0_i32, %c0_i32_0 : i32, i32
  }
  func.func @transform_14(%arg0: i32) -> (i32, i32) {
    %c0_i32 = arith.constant 0 : i32
    %c0_i32_0 = arith.constant 0 : i32
    %c0_i32_1 = arith.constant 0 : i32
    return %c0_i32, %c0_i32_0 : i32, i32
  }
  func.func @transform_15(%arg0: i32) -> (i32, i32, i32) {
    %c0_i32 = arith.constant 0 : i32
    %c0_i32_0 = arith.constant 0 : i32
    %c0_i32_1 = arith.constant 0 : i32
    return %arg0, %c0_i32, %c0_i32_0 : i32, i32, i32
  }
}

</mosaic_0001>

<bundles_post_ra>
// kernel: tpu_custom_call.1
= control target key start
LH: loop header
LB: loop body
LE: loop exit
PB: predicated region body
PF: predicated region fallthrough
CT: control target
= control target key end

     0   :  { %s4192_s0 = inlined_call_operand.vmem [shape: f32[2,16,32], index: 0, kind: input, shape index: {}]   ;;  %s4193_s1 = inlined_call_operand.vmem [shape: f32[2,24,32], index: 1, kind: input, shape index: {}]   ;;  %s4194_s2 = inlined_call_operand.hbm [shape: f32[32,32], index: 2, kind: input, shape index: {}]   ;;  %s4195_s3 = inlined_call_operand.vmem [shape: f32[1,32], index: 3, kind: input, shape index: {}]   ;;  %s4196_s4 = inlined_call_operand.hbm [shape: f32[32,32], index: 4, kind: input, shape index: {}]   ;;  %s4197_s5 = inlined_call_operand.vmem [shape: f32[1,32], index: 5, kind: input, shape index: {}]   ;;  %s4198_s6 = inlined_call_operand.hbm [shape: f32[32,32], index: 6, kind: input, shape index: {}]   ;;  %s4199_s7 = inlined_call_operand.vmem [shape: f32[1,32], index: 7, kind: input, shape index: {}]   ;;  %s4200_s8 = inlined_call_operand.hbm [shape: f32[32,32], index: 8, kind: input, shape index: {}]   ;;  %s4201_s9 = inlined_call_operand.vmem [shape: f32[1,32], index: 9, kind: input, shape index: {}]   ;;  %s4202_s10 = inlined_call_operand.hbm [shape: f32[32,64], index: 10, kind: input, shape index: {}]   ;;  %s4203_s11 = inlined_call_operand.hbm [shape: f32[32,64], index: 11, kind: input, shape index: {}]   ;;  %s4204_s12 = inlined_call_operand.vmem [shape: f32[1,64], index: 12, kind: input, shape index: {}]   ;;  %s4205_s13 = inlined_call_operand.vmem [shape: f32[64,32], index: 13, kind: input, shape index: {}]   ;;  %s4206_s14 = inlined_call_operand.vmem [shape: f32[1,32], index: 14, kind: input, shape index: {}]   ;;  %s4207_s15 = inlined_call_operand.hbm [shape: f32[2,16,32], index: 15, kind: output, shape index: {}]  }
   0x1   :  { %4217 = sst [smem:[#allocation26_spill]] %s4196_s4 }
   0x2   :  { %4218 = sst [smem:[#allocation27_spill]] %s4200_s8 }
   0x3   :  { %4219 = sst [smem:[#allocation28_spill]] %s4207_s15 }
   0x4   :  { %20 = vsyncpa [#allocation3], 0 }
   0x5   :  { %21 = vsyncpa [#allocation6], 0 }
   0x6   :  { %22 = vsyncpa [#allocation9], 0 }
   0x7   :  { %23 = vsyncpa [#allocation12], 0 }
   0x8   :  { %24 = vsyncpa [#allocation4], 0 }
   0x9   :  { %26 = vsyncpa [#allocation4 + $0x1], 0  ;;  %s3225_s18 = smov 0   ;;  %s3227_s19 = smov 0  }
   0xa   :  { %s3229_s20 = smov 0   ;;  %s3231_s21 = smov 0  }
   0xb LB: > { %4220 = sst [smem:[#allocation19_spill]] %s3114_s18  ;;  %s3246_s22 = sadd.s32 4294967295, %s3126_s21   ;;  %s3126_s21 = sphi %s3231_s21, %s4238_s21   ;;  %s3122_s20 = sphi %s3229_s20, %s4240_s20   ;;  %s3118_s19 = sphi %s3227_s19, %s4242_s19   ;;  %s3114_s18 = sphi %s3225_s18, %s4241_s18  }
   0xc   : > { %4221 = sst [smem:[#allocation20_spill]] %s3122_s20  ;;  %s2626_s23 = sadd.s32 4294967294, %s3126_s21  }
   0xd   : > { %4222 = sst [smem:[#allocation21_spill]] %s3126_s21  ;;  %s3250_s24 = sadd.s32 1, %s3126_s21  }
   0xe   : > { %4223 = sst [smem:[#allocation22_spill]] %s3250_s24  ;;  %s364_s25 = sadd.s32 1, %s3122_s20 }
   0xf   : > { %s361_s26 = ssub.s32 %s3126_s21, %s3250_s24  ;;  %p374_p0 = scmp.ne.s32.totalorder %s3122_s20, %s3118_s19 }
  0x10   : > { %p362_p1 = scmp.eq.s32.totalorder %s361_s26, 0  ;;  %p375_p2 = scmp.eq.s32.totalorder %s3246_s22, 1 }
  0x11   : > { %p380_p3 = scmp.ne.s32.totalorder %s3118_s19, %s3114_s18  ;;  %p381_p4 = scmp.eq.s32.totalorder %s2626_s23, 1 }
  0x12   : > { %s3261_s27 = scalar_select %p362_p1, %s3122_s20, %s364_s25  }
  0x13   : > { %p3263_p5 = por %p375_p2, %p374_p0  ;;  %p3267_p6 = por %p381_p4, %p380_p3 }
  0x14   : > { %4224 = sst [smem:[#allocation23_spill]] %s3261_s27  ;;  %p2627_p7 = scmp.ge.s32.totalorder %s3126_s21, 1 }
  0x15   : > { %s4225_s28 = scalar_select %p3263_p5, 1, 0 }
  0x16   : > { %s4227_s29 = scalar_select %p3267_p6, 1, 0 }
  0x17   : > { %4226 = sst [smem:[#allocation24_spill]] %s4225_s28  ;;  %p388_p8 = scmp.lt.s32.totalorder %s3126_s21, 3 }
  0x18   : > { %4228 = sst [smem:[#allocation25_spill]] %s4227_s29  ;;  %p2751_p9 = scmp.eq.s32.totalorder %s3246_s22, 0 }
  0x19   : > { %p3274_p10 = pnand %p2627_p7, %p388_p8  ;;  %s4230_s4 = sld [smem:[#allocation26_spill]] }
  0x1a   : > { %s4231_s8 = sld [smem:[#allocation27_spill]]  ;;  %s3128_s24 = smov [#allocation5]  }
  0x1b   : > { %p2728_p11 = pneg %p3274_p10  ;;  %s418_s29 = sshll.u32 %s3128_s24, 4  ;;  %s419_s29 = int_to_ptr.vmem [resolvable:$true] %s418_s29 }
  0x1c   : > { %s3129_s16 = smov 128   ;;  %s3130_s17 = smov 8  }
  0x1d   : > { %p3288_p12 = pnand %p2751_p9, %p2728_p11  ;;  %s3131_s25 = smov [#allocation8]  }
  0x1e   : > { %s452_s26 = sshll.u32 %s3131_s25, 4  ;;  %s399_s18 = sshll.u32 %s4194_s2, 4  ;;  %s453_s26 = int_to_ptr.vmem [resolvable:$true] %s452_s26  ;;  %s400_s18 = int_to_ptr.hbm [resolvable:$true] %s399_s18 }
  0x1f   : > { %s416_s23 = sshll.u32 %s4230_s4, 4  ;;  %s433_s15 = sshll.u32 %s4198_s6, 4  ;;  %s417_s23 = int_to_ptr.hbm [resolvable:$true] %s416_s23  ;;  %s434_s15 = int_to_ptr.hbm [resolvable:$true] %s433_s15 }
  0x20   : > { %s450_s27 = sshll.u32 %s4231_s8, 4  ;;  %s3132_s28 = smov [#allocation2]   ;;  %s451_s27 = int_to_ptr.hbm [resolvable:$true] %s450_s27 }
  0x21   : > { %2734 = dma.hbm_to_vmem [thread:$0]  (!%p3288_p12), %s417_s23, 512, %s419_s29, [#allocation6], %s3129_s16, %s3129_s16, %s3130_s17  }
  0x22   : > { %2740 = dma.hbm_to_vmem [thread:$0]  (!%p3288_p12), %s451_s27, 512, %s453_s26, [#allocation9], %s3129_s16, %s3129_s16, %s3130_s17  }
  0x23   : > { %s401_s29 = sshll.u32 %s3132_s28, 4  ;;  %s3133_s4 = smov [#allocation7]   ;;  %s402_s29 = int_to_ptr.vmem [resolvable:$true] %s401_s29 }
  0x24   : > { %2731 = dma.hbm_to_vmem [thread:$0]  (!%p3288_p12), %s400_s18, 512, %s402_s29, [#allocation3], %s3129_s16, %s3129_s16, %s3130_s17  }
  0x25   : > { %s435_s8 = sshll.u32 %s3133_s4, 4  ;;  %s467_s27 = sshll.u32 %s4202_s10, 4  ;;  %s436_s8 = int_to_ptr.vmem [resolvable:$true] %s435_s8  ;;  %s468_s27 = int_to_ptr.hbm [resolvable:$true] %s467_s27 }
  0x26   : > { %2737 = dma.hbm_to_vmem [thread:$0]  (!%p3288_p12), %s434_s15, 512, %s436_s8, [#allocation6], %s3129_s16, %s3129_s16, %s3130_s17  }
  0x27   : > { %s481_s26 = sshll.u32 %s4203_s11, 4  ;;  %s3134_s24 = smov [#allocation10]   ;;  %s482_s26 = int_to_ptr.hbm [resolvable:$true] %s481_s26 }
  0x28   : > { %s469_s18 = sshll.u32 %s3134_s24, 4  ;;  %s3135_s29 = smov [#allocation11]   ;;  %s470_s18 = int_to_ptr.vmem [resolvable:$true] %s469_s18 }
  0x29   : > { %2743 = dma.hbm_to_vmem [thread:$0]  (!%p3288_p12), %s468_s27, 512, %s470_s18, [#allocation9], %s3129_s16, %s3129_s16, %s3130_s17  }
  0x2a   : > { %s483_s4 = sshll.u32 %s3135_s29, 4  ;;  %524 = sbr.rel (%p3274_p10) target bundleno = 1486 (0x5ce), region = 80  ;;  %s484_s4 = int_to_ptr.vmem [resolvable:$true] %s483_s4 }
  0x2b   : > { %2746 = dma.hbm_to_vmem [thread:$0]  (!%p3288_p12), %s482_s26, 512, %s484_s4, [#allocation12], %s3129_s16, %s3129_s16, %s3130_s17  }
  0x2f   : > { %3093 = dma.done.wait (%p2751_p9), [#allocation3], 512  }
  0x30   : > { %3095 = vsyncadd (%p2751_p9), [#allocation3], 4294966784 }
  0x31   : > { %3097 = dma.done.wait (%p2751_p9), [#allocation6], 1024  }
  0x32   : > { %3099 = vsyncadd (%p2751_p9), [#allocation6], 4294966272 }
  0x33   : > { %3101 = dma.done.wait (%p2751_p9), [#allocation9], 1024  }
  0x34   : > { %3103 = vsyncadd (%p2751_p9), [#allocation9], 4294966272 }
  0x35   : > { %3105 = dma.done.wait (%p2751_p9), [#allocation12], 512  }
  0x36   : > { %3107 = vsyncadd (%p2751_p9), [#allocation12], 4294966784  ;;  %p603_p13 = scmp.lt.s32.totalorder %s3246_s22, 1  ;;  %v659_v0 = vld [vmem:[#allocation5 + $0x18] sm:$0xff]  ;;  %v658_v1 = vld [vmem:[#allocation5 + $0x10] sm:$0xff]  ;;  %vm626_vm0 = vcmask 261120  }
  0x37   : > { %685 = vmatpush.msra.mxu1 %v659_v0  ;;  %2697 = vmatpush.msra.mxu2 %v659_v0  ;;  %v657_v2 = vld [vmem:[#allocation5 + $0x8] sm:$0xff]  ;;  %v621_v3 = vld [vmem:[#allocation2 + $0x18] sm:$0xff]  ;;  %v620_v4 = vld [vmem:[#allocation2 + $0x10] sm:$0xff]  ;;  %s3136_s26 = smov 104   ;;  %s3137_s24 = smov 112   ;;  %vm754_vm1 = vcmask 1047556  }
  0x38   : > { %s604_s15 = scalar_select %p603_p13, %s3246_s22, 1  ;;  %v656_v5 = vld [vmem:[#allocation5] sm:$0xff]  ;;  %645 = vmatpush.msra.mxu0 %v621_v3  ;;  %v619_v8 = vld [vmem:[#allocation2 + $0x8] sm:$0xff]  ;;  %v702_v9 = vld [vmem:[#allocation7 + $0x18] sm:$0xff]  ;;  %v3139_v41 = vmov 1983009808  }
  0x39   : > { %686 = vmatpush.msra.mxu1 %v658_v1  ;;  %2698 = vmatpush.msra.mxu2 %v658_v1  ;;  %v618_v10 = vld [vmem:[#allocation2] sm:$0xff]  ;;  %v701_v11 = vld [vmem:[#allocation7 + $0x10] sm:$0xff]  ;;  %v700_v13 = vld [vmem:[#allocation7 + $0x8] sm:$0xff]  ;;  %s3138_s18 = smov 120   ;;  %v759_v42 = vunpack.c.l.s4 %v3139_v41  ;;  %v3140_v57 = vmov 1934713408  }
  0x3a   : > { %s2701_s20 = smul.u32 24, %s604_s15  ;;  %s2695_s8 = sshll.u32 %s604_s15, 4  ;;  %646 = vmatpush.msra.mxu0 %v620_v4  ;;  %v699_v14 = vld [vmem:[#allocation7] sm:$0xff]  ;;  %v783_v58 = vunpack.c.l.s4 %v3140_v57  ;;  %vm1694_vm2 = vcmask 64512   ;;  %vm1847_vm3 = vcmask 195584   ;;  %vm2322_vm4 = vcmask 130048  }
  0x3b   : > { %687 = vmatpush.msra.mxu1 %v657_v2  ;;  %2699 = vmatpush.msra.mxu2 %v657_v2  ;;  %s3364_s27 = scalar_lea.vmem %s4192_s0, %s2695_s8  ;;  %v2828_v17 = vld [vmem:[%s4197_s5] ss:$0 sm:$0xff]  ;;  %v3433_v45 = vunpack.c.0.s8 %v759_v42  ;;  %s3141_s30 = smov 24   ;;  %vm2444_vm5 = vcmask 523264  }
  0x3c   : > { %s3357_s17 = scalar_lea.vmem %s4193_s1, %s2701_s20  ;;  %647 = vmatpush.msra.mxu0 %v619_v8  ;;  %v613_v12 = vld [vmem:[%s3364_s27] sm:$0xff]  ;;  %v614_v16 = vld [vmem:[%s3364_s27 + $0x8] sm:$0xff]  ;;  %s3142_s16 = smov 16  }
  0x3d   : > { %v615_v6 = vld [vmem:[%s3357_s17] sm:$0xff]  ;;  %v617_v7 = vld [vmem:[%s3357_s17 + $0x10] sm:$0xff]  ;;  %688 = vmatpush.msra.mxu1 %v656_v5  ;;  %2700 = vmatpush.msra.mxu2 %v656_v5  ;;  %v616_v15 = vld [vmem:[%s3357_s17 + $0x8] sm:$0xff]  ;;  %s3143_s17 = smov 8   ;;  %s600_s28 = sand.u32 1, %s3118_s19  }
  0x3e   : > { %2648 = vmatmul.msk.f32.vlgmr.msra.gmra.mxu1 %vm626_vm0, %v615_v6  ;;  %2650 = vmatmul.msk.f32.vlgmr.msra.gmra.mxu2 %vm626_vm0, %v617_v7  ;;  %v2829_v25 = vld [vmem:[%s4195_s3] ss:$0 sm:$0xff]  ;;  %s2696_s29 = sshll.u32 %s3246_s22, 4 }
  0x3f   : > { %719 = vmatpush.msrb.mxu2 %v702_v9  ;;  %648 = vmatpush.msra.mxu0 %v618_v10  ;;  %v2830_v29 = vld [vmem:[%s4199_s7] ss:$0 sm:$0xff] }
  0x40   : > { %2646 = vmatmul.msk.f32.vlgmr.msra.gmra.mxu0 %vm626_vm0, %v613_v12 }
  0x41   : > { %720 = vmatpush.msrb.mxu2 %v701_v11 }
  0x43   : > { %721 = vmatpush.msrb.mxu2 %v700_v13 }
  0x45   : > { %722 = vmatpush.msrb.mxu2 %v699_v14 }
  0x46   : > { %2649 = vmatmul.msk.f32.gmra.mxu1 %vm626_vm0, %v616_v15  ;;  %2651 = vmatmul.msk.f32.vlgmr.msrb.gmra.mxu2 %vm626_vm0, %v615_v6 }
  0x48   : > { %2647 = vmatmul.msk.f32.gmra.mxu0 %vm626_vm0, %v614_v16 }
  0x4e   : > { %2652 = vmatmul.msk.f32.gmra.mxu2 %vm626_vm0, %v616_v15 }
  0x56   : > { %2653 = vmatmul.msk.f32.gmra.mxu2 %vm626_vm0, %v617_v7  ;;  %v3453_v7 = vunpack.c.0.s8 %v783_v58 }
  0xbb   : > { %v690_v18 = vpop.f32.mrf.mxu1 }
  0xbc   : > { %v3380_v19 = vadd.f32 %v2828_v17, %v690_v18 }
  0xbd   : > { %v650_v24 = vpop.f32.mrf.mxu0 }
  0xbe   : > { %995 = vrot.lane.b32.xlu2 %v3380_v19, %s3136_s26  ;;  %986 = vrot.lane.b32.xlu1 %v3380_v19, %s3137_s24  ;;  %v3400_v26 = vadd.f32 %v2829_v25, %v650_v24  ;;  %v1006_v55 = vrot.slane %v3380_v19, 4 }
  0xc0   : > { %v756_v60 = vrot.slane %v3400_v26, 4 }
  0xc1   : > { %v696_v20 = vpop.f32.mrf.mxu2 }
  0xc2   : > { %v3386_v21 = vadd.f32 %v2828_v17, %v696_v20 }
  0xc3   : > { %v693_v22 = vpop.f32.mrf.mxu1 }
  0xc4   : > { %v694_v23 = vadd.f32 %v2828_v17, %v693_v22  ;;  %981 = vrot.lane.b32.xlu0 %v3386_v21, %s3138_s18  ;;  %v1118_v2 = vrot.slane %v3386_v21, 4 }
  0xc5   : > { %v653_v27 = vpop.f32.mrf.mxu0 }
  0xc6   : > { %988 = vrot.lane.b32.xlu2 %v694_v23, %s3137_s24  ;;  %999 = vrot.lane.b32.xlu1 %v3386_v21, %s3136_s26  ;;  %v3408_v28 = vadd.f32 %v2829_v25, %v653_v27  ;;  %v1062_v43 = vrot.slane %v694_v23, 4 }
  0xc8   : > { %v812_v3 = vrot.slane %v3408_v28, 4 }
  0xc9   : > { %v724_v30 = vpop.f32.mrf.mxu2 }
  0xca   : > { %v3421_v31 = vadd.f32 %v2830_v29, %v724_v30 }
  0xcc   : > { %990 = vrot.lane.b32.xlu0 %v3386_v21, %s3137_s24 }
  0xce   : > { %979 = vrot.lane.b32.xlu1 %v694_v23, %s3138_s18  ;;  %997 = vrot.lane.b32.xlu2 %v694_v23, %s3136_s26 }
  0xd1   : > { %v727_v32 = vpop.f32.mrf.mxu2 }
  0xd2   : > { %v3423_v33 = vadd.f32 %v2830_v29, %v727_v32 }
  0xd4   : > { %977 = vrot.lane.b32.xlu0 %v3380_v19, %s3138_s18 }
  0xd6   : > { %741 = vrot.lane.b32.xlu1 %v3400_v26, %s3137_s24  ;;  %747 = vrot.lane.b32.xlu2 %v3400_v26, %s3136_s26 }
  0xd9   : > { %v730_v34 = vpop.f32.mrf.mxu2 }
  0xda   : > { %v3425_v35 = vadd.f32 %v2830_v29, %v730_v34 }
  0xdc   : > { %735 = vrot.lane.b32.xlu0 %v3400_v26, %s3138_s18  ;;  %v2813_v36 = vpack.i.bf16 %v3423_v33, %v3425_v35 }
  0xde   : > { %743 = vrot.lane.b32.xlu1 %v3408_v28, %s3137_s24  ;;  %749 = vrot.lane.b32.xlu2 %v3408_v28, %s3136_s26 }
  0xe4   : > { %737 = vrot.lane.b32.xlu0 %v3408_v28, %s3138_s18 }
  0xe6   : > { %2814 = vrot.lane.b32.xlu1 %v2813_v36, %s3138_s18  ;;  %2819 = vrot.lane.b32.xlu2 %v2813_v36, %s3137_s24 }
  0xec   : > { %2824 = vrot.lane.b32.xlu0 %v2813_v36, %s3136_s26 }
 0x118   : > { %v3429_v37 = vpop.permute.xlu2 %995 }
 0x119   : > { %v1016_v4 = vrot.slane %v3429_v37, 4 }
 0x120   : > { %v989_v38 = vpop.permute.xlu2 %988 }
 0x121   : > { %v1060_v44 = vrot.slane %v989_v38, 4  ;;  %v1063_v47 = vsel %vm754_vm1, %v989_v38, %v1062_v43 }
 0x122   : > { %v1071_v54 = vperm.slane %v1063_v47, %v3433_v45 }
 0x123   : > { %v1061_v51 = vsel %vm754_vm1, %v1060_v44, %v694_v23 }
 0x124   : > { %v1067_v61 = vperm.slane %v1061_v51, %v3433_v45  ;;  %v1098_v5 = vrot.slane %v1071_v54, 4 }
 0x126   : > { %v1086_v13 = vrot.slane %v1067_v61, 4 }
 0x128   : > { %v998_v39 = vpop.permute.xlu2 %997 }
 0x129   : > { %v1072_v6 = vrot.slane %v998_v39, 4 }
 0x130   : > { %v987_v40 = vpop.permute.xlu1 %986  ;;  %v3440_v56 = vpop.permute.xlu2 %747 }
 0x131   : > { %v1004_v49 = vrot.slane %v987_v40, 4  ;;  %v1007_v63 = vsel %vm754_vm1, %v987_v40, %v1006_v55  ;;  %v766_v14 = vrot.slane %v3440_v56, 4 }
 0x132   : > { %v3459_v10 = vperm.slane %v1007_v63, %v3433_v45 }
 0x133   : > { %v1005_v62 = vsel %vm754_vm1, %v1004_v49, %v3380_v19 }
 0x134   : > { %v3456_v9 = vperm.slane %v1005_v62, %v3433_v45  ;;  %v1042_v30 = vrot.slane %v3459_v10, 4 }
 0x136   : > { %v982_v46 = vpop.permute.xlu0 %981  ;;  %v1030_v29 = vrot.slane %v3456_v9, 4 }
 0x137   : > { %v1130_v48 = vrot.slane %v982_v46, 4 }
 0x138   : > { %v1000_v50 = vpop.permute.xlu1 %999  ;;  %v3477_v40 = vpop.permute.xlu2 %749 }
 0x139   : > { %v1128_v52 = vrot.slane %v1000_v50, 4  ;;  %v1131_v53 = vsel %vm754_vm1, %v1000_v50, %v1130_v48  ;;  %v822_v55 = vrot.slane %v3477_v40, 4 }
 0x13a   : > { %v1139_v0 = vperm.slane %v1131_v53, %v3433_v45 }
 0x13b   : > { %v1129_v59 = vsel %vm754_vm1, %v1128_v52, %v982_v46 }
 0x13c   : > { %v1135_v1 = vperm.slane %v1129_v59, %v3433_v45  ;;  %v1152_v15 = vrot.slane %v1139_v0, 4 }
 0x13e   : > { %v991_v8 = vpop.permute.xlu0 %990  ;;  %v1140_v18 = vrot.slane %v1135_v1, 4 }
 0x13f   : > { %v1116_v11 = vrot.slane %v991_v8, 4  ;;  %v1119_v12 = vsel %vm754_vm1, %v991_v8, %v1118_v2 }
 0x140   : > { %v1127_v16 = vperm.slane %v1119_v12, %v3433_v45  ;;  %v980_v17 = vpop.permute.xlu1 %979 }
 0x141   : > { %v1117_v19 = vsel %vm754_vm1, %v1116_v11, %v3386_v21  ;;  %v1073_v20 = vsel %vm754_vm1, %v1072_v6, %v980_v17  ;;  %v1074_v22 = vrot.slane %v980_v17, 4 }
 0x142   : > { %v1123_v23 = vperm.slane %v1117_v19, %v3433_v45  ;;  %v1153_v24 = vsel %vm754_vm1, %v1152_v15, %v1127_v16  ;;  %v1154_v25 = vrot.slane %v1127_v16, 4  ;;  %v1079_v27 = vperm.slane %v1073_v20, %v3433_v45 }
 0x143   : > { %v1159_v32 = vperm.slane %v1153_v24, %v3453_v7  ;;  %v1075_v34 = vsel %vm754_vm1, %v998_v39, %v1074_v22 }
 0x144   : > { %v1141_v21 = vsel %vm754_vm1, %v1140_v18, %v1123_v23  ;;  %v1142_v36 = vrot.slane %v1123_v23, 4  ;;  %v1155_v38 = vsel %vm754_vm1, %v1139_v0, %v1154_v25  ;;  %v1083_v41 = vperm.slane %v1075_v34, %v3433_v45 }
 0x145   : > { %v3481_v42 = vperm.slane %v1141_v21, %v3453_v7  ;;  %v1163_v43 = vperm.slane %v1155_v38, %v3453_v7  ;;  %v1168_v44 = vrot.slane %v1159_v32, 4  ;;  %v1084_v46 = vrot.slane %v1079_v27, 4 }
 0x146   : > { %v1143_v47 = vsel %vm754_vm1, %v1135_v1, %v1142_v36  ;;  %v1087_v39 = vsel %vm754_vm1, %v1079_v27, %v1086_v13  ;;  %v1096_v48 = vrot.slane %v1083_v41, 4  ;;  %v1099_v49 = vsel %vm754_vm1, %v1083_v41, %v1098_v5  ;;  %v978_v50 = vpop.permute.xlu0 %977 }
 0x147   : > { %v1151_v51 = vperm.slane %v1143_v47, %v3453_v7  ;;  %v1164_v52 = vrot.slane %v3481_v42, 4  ;;  %v1170_v53 = vrot.slane %v1163_v43, 4  ;;  %v1085_v57 = vsel %vm754_vm1, %v1084_v46, %v1067_v61 }
 0x148   : > { %v1095_v58 = vperm.slane %v1087_v39, %v3453_v7  ;;  %v1097_v59 = vsel %vm754_vm1, %v1096_v48, %v1071_v54  ;;  %v1107_v62 = vperm.slane %v1099_v49, %v3453_v7  ;;  %v1169_v0 = vsel %vm754_vm1, 0.0, %v1168_v44  ;;  %v742_v15 = vpop.permute.xlu1 %741 }
 0x149   : > { %v3494_v63 = vrot.slane %v1151_v51, 4  ;;  %v1171_v1 = vsel %vm754_vm1, 0.0, %v1170_v53  ;;  %v3499_v2 = vperm.slane %v1085_v57, %v3453_v7  ;;  %v3502_v6 = vperm.slane %v1097_v59, %v3453_v7 }
 0x14a   : > { %v1296_v5 = vrot.slane %v1171_v1, 4  ;;  %v3504_v61 = vrot.slane %v1095_v58, 4  ;;  %v3506_v8 = vrot.slane %v1107_v62, 4  ;;  %v1017_v12 = vsel %vm754_vm1, %v1016_v4, %v978_v50 }
 0x14b   : > { %v3510_v54 = vsel %vm754_vm1, 0.0, %v3494_v63  ;;  %v1108_v11 = vrot.slane %v3499_v2, 4  ;;  %v1018_v13 = vrot.slane %v978_v50, 4  ;;  %v3516_v17 = vsel %vm754_vm1, %v1170_v53, %v1159_v32 }
 0x14c   : > { %v1285_v16 = vrot.slane %v3510_v54, 4  ;;  %v3520_v18 = vsel %vm754_vm1, 0.0, %v3504_v61  ;;  %v1112_v19 = vrot.slane %v3502_v6, 4  ;;  %v3524_v20 = vsel %vm754_vm1, %v1296_v5, %v1169_v0 }
 0x14d   : > { %v3527_v22 = vsel %vm754_vm1, 0.0, %v1108_v11  ;;  %v3531_v4 = vsel %vm754_vm1, 0.0, %v3506_v8  ;;  %v1019_v23 = vsel %vm754_vm1, %v3429_v37, %v1018_v13  ;;  %v1231_v25 = vrot.slane %v3520_v18, 4 }
 0x14e   : > { %v3536_v24 = vsel %vm754_vm1, 0.0, %v1112_v19  ;;  %v1023_v27 = vperm.slane %v1017_v12, %v3433_v45  ;;  %v1027_v32 = vperm.slane %v1019_v23, %v3433_v45  ;;  %v736_v34 = vpop.permute.xlu0 %735  ;;  %v753_v21 = vrot.slane %v742_v15, 4 }
 0x14f   : > { %v757_v36 = vsel %vm754_vm1, %v742_v15, %v756_v60  ;;  %v767_v38 = vsel %vm754_vm1, %v766_v14, %v736_v34  ;;  %v768_v37 = vrot.slane %v736_v34, 4 }
 0x150   : > { %v1028_v41 = vrot.slane %v1023_v27, 4  ;;  %v1031_v43 = vsel %vm754_vm1, %v1023_v27, %v1030_v29  ;;  %v1040_v44 = vrot.slane %v1027_v32, 4  ;;  %v1043_v46 = vsel %vm754_vm1, %v1027_v32, %v1042_v30  ;;  %v744_v1 = vpop.permute.xlu1 %743 }
 0x151   : > { %v1039_v47 = vperm.slane %v1031_v43, %v3453_v7  ;;  %v1051_v39 = vperm.slane %v1043_v46, %v3453_v7  ;;  %v755_v48 = vsel %vm754_vm1, %v753_v21, %v3400_v26  ;;  %v765_v60 = vperm.slane %v757_v36, %v3433_v45 }
 0x152   : > { %v1029_v49 = vsel %vm754_vm1, %v1028_v41, %v3456_v9  ;;  %v1041_v14 = vsel %vm754_vm1, %v1040_v44, %v3459_v10  ;;  %v761_v29 = vperm.slane %v755_v48, %v3433_v45  ;;  %v769_v30 = vsel %vm754_vm1, %v3440_v56, %v768_v37 }
 0x153   : > { %v3562_v50 = vperm.slane %v1029_v49, %v3453_v7  ;;  %v3565_v51 = vperm.slane %v1041_v14, %v3453_v7  ;;  %v3567_v26 = vrot.slane %v1039_v47, 4  ;;  %v3569_v53 = vrot.slane %v1051_v39, 4 }
 0x154   : > { %v1242_v9 = vrot.slane %v3531_v4, 4  ;;  %v780_v57 = vrot.slane %v761_v29, 4  ;;  %v773_v10 = vperm.slane %v767_v38, %v3433_v45  ;;  %v777_v58 = vperm.slane %v769_v30, %v3433_v45 }
 0x155   : > { %v1052_v59 = vrot.slane %v3562_v50, 4  ;;  %v3577_v56 = vsel %vm754_vm1, 0.0, %v3567_v26  ;;  %v3581_v62 = vsel %vm754_vm1, 0.0, %v3569_v53  ;;  %v792_v0 = vrot.slane %v765_v60, 4 }
 0x156   : > { %v1056_v5 = vrot.slane %v3565_v51, 4  ;;  %v1177_v11 = vrot.slane %v3577_v56, 4  ;;  %v778_v12 = vrot.slane %v773_v10, 4  ;;  %v781_v13 = vsel %vm754_vm1, %v773_v10, %v780_v57  ;;  %v738_v32 = vpop.permute.xlu0 %737 }
 0x157   : > { %v3587_v15 = vsel %vm754_vm1, 0.0, %v1052_v59  ;;  %v1188_v19 = vrot.slane %v3581_v62, 4  ;;  %v789_v23 = vperm.slane %v781_v13, %v3453_v7  ;;  %v790_v27 = vrot.slane %v777_v58, 4 }
 0x158   : > { %v779_v34 = vsel %vm754_vm1, %v778_v12, %v761_v29  ;;  %v793_v21 = vsel %vm754_vm1, %v777_v58, %v792_v0  ;;  %v810_v36 = vrot.slane %v744_v1, 4  ;;  %v813_v38 = vsel %vm754_vm1, %v744_v1, %v812_v3 }
 0x159   : > { %v785_v37 = vperm.slane %v779_v34, %v3453_v7  ;;  %v791_v41 = vsel %vm754_vm1, %v790_v27, %v765_v60  ;;  %v801_v43 = vperm.slane %v793_v21, %v3453_v7  ;;  %v804_v44 = vrot.slane %v789_v23, 4 }
 0x15a   : > { %v3600_v46 = vperm.slane %v791_v41, %v3453_v7  ;;  %v811_v47 = vsel %vm754_vm1, %v810_v36, %v3408_v28  ;;  %v821_v39 = vperm.slane %v813_v38, %v3433_v45  ;;  %v823_v48 = vsel %vm754_vm1, %v822_v55, %v738_v32 }
 0x15b   : > { %v802_v3 = vrot.slane %v785_v37, 4  ;;  %v805_v49 = vsel %vm754_vm1, 0.0, %v804_v44  ;;  %v3609_v14 = vrot.slane %v801_v43, 4  ;;  %v866_v60 = vsel %vm754_vm1, %v804_v44, %v785_v37 }
 0x15c   : > { %v3613_v29 = vsel %vm754_vm1, 0.0, %v1056_v5  ;;  %v806_v30 = vrot.slane %v3600_v46, 4  ;;  %v871_v57 = vrot.slane %v805_v49, 4  ;;  %v817_v28 = vperm.slane %v811_v47, %v3433_v45 }
 0x15d   : > { %v803_v10 = vsel %vm754_vm1, 0.0, %v802_v3  ;;  %v3620_v55 = vsel %vm754_vm1, 0.0, %v3609_v14  ;;  %v3623_v58 = vperm.slane %v866_v60, %v3433_v45  ;;  %v824_v59 = vrot.slane %v738_v32, 4 }
 0x15e   : > { %v3626_v0 = vsel %vm754_vm1, %v871_v57, %v803_v10  ;;  %v836_v1 = vrot.slane %v817_v28, 4  ;;  %v848_v5 = vrot.slane %v821_v39, 4  ;;  %v829_v12 = vperm.slane %v823_v48, %v3433_v45 }
 0x15f   : > { %v825_v13 = vsel %vm754_vm1, %v3477_v40, %v824_v59  ;;  %v1165_v23 = vsel %vm754_vm1, 0.0, %v1164_v52  ;;  %v1280_v27 = vsel %vm754_vm1, %v3494_v63, %v3481_v42  ;;  %v1295_v32 = vperm.slane %v3516_v17, %v3433_v45 }
 0x160   : > { %v833_v34 = vperm.slane %v825_v13, %v3433_v45  ;;  %v834_v21 = vrot.slane %v829_v12, 4  ;;  %v837_v36 = vsel %vm754_vm1, %v829_v12, %v836_v1  ;;  %v1284_v38 = vperm.slane %v1280_v27, %v3433_v45 }
 0x161   : > { %v882_v40 = vrot.slane %v3620_v55, 4  ;;  %v845_v37 = vperm.slane %v837_v36, %v3453_v7  ;;  %v1286_v52 = vsel %vm754_vm1, %v1285_v16, %v1165_v23  ;;  %v1301_v42 = vperm.slane %v3524_v20, %v3433_v45 }
 0x162   : > { %v835_v63 = vsel %vm754_vm1, %v834_v21, %v817_v28  ;;  %v846_v17 = vrot.slane %v833_v34, 4  ;;  %v849_v41 = vsel %vm754_vm1, %v833_v34, %v848_v5  ;;  %v1290_v43 = vperm.slane %v1286_v52, %v3433_v45 }
 0x163   : > { %v841_v44 = vperm.slane %v835_v63, %v3453_v7  ;;  %v857_v47 = vperm.slane %v849_v41, %v3453_v7  ;;  %v860_v48 = vrot.slane %v845_v37, 4  ;;  %v1304_v3 = vrot.slane %v1284_v38, 4 }
 0x164   : > { %v847_v54 = vsel %vm754_vm1, %v846_v17, %v821_v39  ;;  %v1302_v49 = vrot.slane %v1290_v43, 4  ;;  %v1314_v16 = vrot.slane %v1301_v42, 4  ;;  %v1316_v60 = vrot.slane %v1295_v32, 4 }
 0x165   : > { %v3656_v20 = vperm.slane %v847_v54, %v3453_v7  ;;  %v858_v57 = vrot.slane %v841_v44, 4  ;;  %v3659_v28 = vsel %vm754_vm1, 0.0, %v860_v48  ;;  %v3661_v10 = vrot.slane %v857_v47, 4 }
 0x166   : > { %v920_v59 = vsel %vm754_vm1, %v860_v48, %v841_v44  ;;  %v1303_v1 = vsel %vm754_vm1, %v1302_v49, %v1284_v38  ;;  %v1315_v5 = vsel %vm754_vm1, %v1314_v16, %v1295_v32  ;;  %v925_v23 = vrot.slane %v3659_v28, 4 }
 0x167   : > { %v3667_v39 = vsel %vm754_vm1, 0.0, %v858_v57  ;;  %v862_v12 = vrot.slane %v3656_v20, 4  ;;  %v3672_v13 = vsel %vm754_vm1, 0.0, %v3661_v10  ;;  %v3676_v27 = vperm.slane %v920_v59, %v3433_v45 }
 0x168   : > { %v1309_v34 = vperm.slane %v1303_v1, %v3453_v7  ;;  %v1321_v21 = vperm.slane %v1315_v5, %v3453_v7  ;;  %v1305_v32 = vsel %vm754_vm1, %v1290_v43, %v1304_v3  ;;  %v1317_v38 = vsel %vm754_vm1, %v1301_v42, %v1316_v60 }
 0x169   : > { %v3682_v36 = vperm.slane %v1305_v32, %v3453_v7  ;;  %v1226_v37 = vsel %vm754_vm1, %v3504_v61, %v3499_v2  ;;  %v1232_v52 = vsel %vm754_vm1, %v1231_v25, %v3527_v22  ;;  %v3693_v17 = vperm.slane %v1317_v38, %v3453_v7 }
 0x16a   : > { %v1326_v63 = vrot.slane %v1321_v21, 4  ;;  %v1328_v41 = vrot.slane %v1309_v34, 4  ;;  %v1230_v43 = vperm.slane %v1226_v37, %v3433_v45  ;;  %v1236_v42 = vperm.slane %v1232_v52, %v3433_v45 }
 0x16b   : > { %v1332_v44 = vrot.slane %v3682_v36, 4  ;;  %v1237_v2 = vsel %vm754_vm1, %v3506_v8, %v3502_v6  ;;  %v1243_v61 = vsel %vm754_vm1, %v1242_v9, %v3536_v24  ;;  %v1172_v4 = vsel %vm754_vm1, %v3567_v26, %v3562_v50 }
 0x16c   : > { %v1327_v18 = vsel %vm754_vm1, %v1326_v63, %v1309_v34  ;;  %v1329_v22 = vsel %vm754_vm1, %v1321_v21, %v1328_v41  ;;  %v1241_v25 = vperm.slane %v1237_v2, %v3433_v45  ;;  %v1247_v47 = vperm.slane %v1243_v61, %v3433_v45 }
 0x16d   : > { %2654 = vmatpush.xpose.msk.msra.mxu3 %vm1694_vm2, %v1327_v18  ;;  %v1333_v48 = vsel %vm754_vm1, %v3693_v17, %v1332_v44  ;;  %2659 = vmatpush.xpose.msk.msrb.mxu0 %vm1694_vm2, %v1329_v22  ;;  %v1248_v6 = vrot.slane %v1236_v42, 4  ;;  %v1250_v8 = vrot.slane %v1230_v43, 4  ;;  %v1176_v3 = vperm.slane %v1172_v4, %v3433_v45 }
 0x16e   : > { %2669 = vmatpush.xpose.msk.msrb.mxu1 %vm1694_vm2, %v1333_v48  ;;  %v1260_v24 = vrot.slane %v1247_v47, 4  ;;  %v1262_v9 = vrot.slane %v1241_v25, 4  ;;  %v1178_v54 = vsel %vm754_vm1, %v1177_v11, %v3587_v15  ;;  %v1183_v50 = vsel %vm754_vm1, %v3569_v53, %v3565_v51 }
 0x16f   : > { %v1249_v49 = vsel %vm754_vm1, %v1248_v6, %v1230_v43  ;;  %v1251_v16 = vsel %vm754_vm1, %v1236_v42, %v1250_v8  ;;  %v1182_v60 = vperm.slane %v1178_v54, %v3433_v45  ;;  %v1187_v1 = vperm.slane %v1183_v50, %v3433_v45 }
 0x170   : > { %v1255_v26 = vperm.slane %v1249_v49, %v3453_v7  ;;  %v1261_v57 = vsel %vm754_vm1, %v1260_v24, %v1241_v25  ;;  %v1259_v59 = vperm.slane %v1251_v16, %v3453_v7  ;;  %v1263_v56 = vsel %vm754_vm1, %v1247_v47, %v1262_v9 }
 0x171   : > { %v1267_v11 = vperm.slane %v1261_v57, %v3453_v7  ;;  %v1271_v15 = vperm.slane %v1263_v56, %v3453_v7  ;;  %v1189_v5 = vsel %vm754_vm1, %v1188_v19, %v3613_v29  ;;  %v1194_v21 = vrot.slane %v1182_v60, 4 }
 0x172   : > { %v1278_v51 = vrot.slane %v1259_v59, 4  ;;  %v1274_v53 = vrot.slane %v1255_v26, 4  ;;  %v1193_v34 = vperm.slane %v1189_v5, %v3433_v45  ;;  %v936_v32 = vrot.slane %v3672_v13, 4 }
 0x173   : > { %v1272_v38 = vrot.slane %v1267_v11, 4  ;;  %v1196_v37 = vrot.slane %v1176_v3, 4  ;;  %v1208_v52 = vrot.slane %v1187_v1, 4  ;;  %v1195_v43 = vsel %vm754_vm1, %v1194_v21, %v1176_v3 }
 0x174   : > { %v1279_v63 = vsel %vm754_vm1, %v1271_v15, %v1278_v51  ;;  %v1275_v41 = vsel %vm754_vm1, %v1267_v11, %v1274_v53  ;;  %v1206_v44 = vrot.slane %v1193_v34, 4  ;;  %v1201_v19 = vperm.slane %v1195_v43, %v3453_v7 }
 0x175   : > { %v1273_v62 = vsel %vm754_vm1, %v1272_v38, %v1255_v26  ;;  %2670 = vmatpush.xpose.msk.msrb.mxu1 %vm1694_vm2, %v1279_v63  ;;  %2660 = vmatpush.xpose.msk.msrb.mxu0 %vm1694_vm2, %v1275_v41  ;;  %v1197_v29 = vsel %vm754_vm1, %v1182_v60, %v1196_v37  ;;  %v807_v13 = vsel %vm754_vm1, 0.0, %v806_v30  ;;  %v1209_v61 = vsel %vm754_vm1, %v1193_v34, %v1208_v52 }
 0x176   : > { %2655 = vmatpush.xpose.msk.msra.mxu3 %vm1694_vm2, %v1273_v62  ;;  %v1207_v42 = vsel %vm754_vm1, %v1206_v44, %v1187_v1  ;;  %v1205_v2 = vperm.slane %v1197_v29, %v3453_v7  ;;  %v1330_v18 = vrot.slane %v3693_v17, 4  ;;  %v1217_v25 = vperm.slane %v1209_v61, %v3453_v7 }
 0x177   : > { %v1213_v22 = vperm.slane %v1207_v42, %v3453_v7  ;;  %v1220_v47 = vrot.slane %v1201_v19, 4  ;;  %v876_v48 = vperm.slane %v3626_v0, %v3433_v45  ;;  %v877_v30 = vsel %vm754_vm1, %v3609_v14, %v3600_v46 }
 0x178   : > { %v1224_v6 = vrot.slane %v1205_v2, 4  ;;  %v883_v8 = vsel %vm754_vm1, %v882_v40, %v807_v13  ;;  %v890_v4 = vrot.slane %v3623_v58, 4  ;;  %v881_v9 = vperm.slane %v877_v30, %v3433_v45 }
 0x179   : > { %v1218_v17 = vrot.slane %v1213_v22, 4  ;;  %v1221_v24 = vsel %vm754_vm1, %v1213_v22, %v1220_v47  ;;  %v887_v3 = vperm.slane %v883_v8, %v3433_v45  ;;  %v1276_v46 = vrot.slane %v1271_v15, 4 }
 0x17a   : > { %v1225_v0 = vsel %vm754_vm1, %v1217_v25, %v1224_v6  ;;  %2661 = vmatpush.xpose.msk.msrb.mxu0 %vm1694_vm2, %v1221_v24  ;;  %v891_v54 = vsel %vm754_vm1, %v876_v48, %v890_v4  ;;  %v888_v14 = vrot.slane %v876_v48, 4  ;;  %v902_v49 = vrot.slane %v881_v9, 4  ;;  %v2815_v48 = vpop.permute.xlu1 %2814 }
 0x17b   : > { %v1219_v55 = vsel %vm754_vm1, %v1218_v17, %v1201_v19  ;;  %2671 = vmatpush.xpose.msk.msrb.mxu1 %vm1694_vm2, %v1225_v0  ;;  %v899_v40 = vperm.slane %v891_v54, %v3453_v7  ;;  %v900_v16 = vrot.slane %v887_v3, 4  ;;  %v1331_v60 = vsel %vm754_vm1, %v1330_v18, %v3682_v36 }
 0x17c   : > { %2656 = vmatpush.xpose.msk.msra.mxu3 %vm1694_vm2, %v1219_v55  ;;  %v1277_v50 = vsel %vm754_vm1, %v1276_v46, %v1259_v59  ;;  %v889_v26 = vsel %vm754_vm1, %v888_v14, %v3623_v58  ;;  %v863_v57 = vsel %vm754_vm1, 0.0, %v862_v12  ;;  %v903_v56 = vsel %vm754_vm1, %v887_v3, %v902_v49 }
 0x17d   : > { %v918_v11 = vrot.slane %v899_v40, 4  ;;  %v895_v15 = vperm.slane %v889_v26, %v3453_v7  ;;  %v901_v1 = vsel %vm754_vm1, %v900_v16, %v881_v9  ;;  %v911_v36 = vperm.slane %v903_v56, %v3453_v7  ;;  %v2825_v9 = vpop.permute.xlu0 %2824 }
 0x17e   : > { %v907_v59 = vperm.slane %v901_v1, %v3453_v7  ;;  %v1222_v5 = vrot.slane %v1217_v25, 4  ;;  %v926_v58 = vsel %vm754_vm1, %v925_v23, %v3667_v39  ;;  %v931_v53 = vsel %vm754_vm1, %v3661_v10, %v3656_v20 }
 0x17f   : > { %v914_v12 = vrot.slane %v895_v15, 4  ;;  %v930_v51 = vperm.slane %v926_v58, %v3433_v45  ;;  %v937_v34 = vsel %vm754_vm1, %v936_v32, %v863_v57  ;;  %v919_v21 = vsel %vm754_vm1, %v911_v36, %v918_v11 }
 0x180   : > { %2664 = vmatpush.xpose.msk.msrb.mxu3 %vm1694_vm2, %v1331_v60  ;;  %v912_v38 = vrot.slane %v907_v59, 4  ;;  %v935_v37 = vperm.slane %v931_v53, %v3433_v45  ;;  %v941_v52 = vperm.slane %v937_v34, %v3433_v45  ;;  %2672 = vmatmul.msk.f32.vlgmr.msrb.gmra.mxu1 %vm1694_vm2, %v919_v21  ;;  %v944_v39 = vrot.slane %v3676_v27, 4  ;;  %v2820_v60 = vpop.permute.xlu2 %2819 }
 0x181   : > { %v915_v28 = vsel %vm754_vm1, %v907_v59, %v914_v12  ;;  %v942_v23 = vrot.slane %v930_v51, 4  ;;  %v1223_v63 = vsel %vm754_vm1, %v1222_v5, %v1205_v2  ;;  %v916_v47 = vrot.slane %v911_v36, 4 }
 0x182   : > { %2662 = vmatmul.msk.f32.vlgmr.msrb.gmra.mxu0 %vm1694_vm2, %v915_v28  ;;  %v913_v20 = vsel %vm754_vm1, %v912_v38, %v895_v15  ;;  %v956_v10 = vrot.slane %v935_v37, 4  ;;  %v954_v32 = vrot.slane %v941_v52, 4  ;;  %v945_v41 = vsel %vm754_vm1, %v930_v51, %v944_v39 }
 0x183   : > { %2657 = vmatmul.msk.f32.vlgmr.msra.gmra.mxu3 %vm1694_vm2, %v913_v20  ;;  %v943_v43 = vsel %vm754_vm1, %v942_v23, %v3676_v27  ;;  %v953_v44 = vperm.slane %v945_v41, %v3453_v7  ;;  %v2817_v6 = vunpack.i.h.bf16 %v2815_v48  ;;  %v2816_v30 = vunpack.i.l.bf16 %v2815_v48 }
 0x184   : > { %2665 = vmatpush.xpose.msk.msrb.mxu3 %vm1694_vm2, %v1277_v50  ;;  %v957_v62 = vsel %vm754_vm1, %v941_v52, %v956_v10  ;;  %v949_v19 = vperm.slane %v943_v43, %v3453_v7  ;;  %v955_v29 = vsel %vm754_vm1, %v954_v32, %v935_v37  ;;  %v917_v8 = vsel %vm754_vm1, %v916_v47, %v899_v40 }
 0x185   : > { %v965_v13 = vperm.slane %v957_v62, %v3453_v7  ;;  %v961_v42 = vperm.slane %v955_v29, %v3453_v7  ;;  %v972_v2 = vrot.slane %v953_v44, 4  ;;  %v1434_v4 = vrot.slane %v2817_v6, 4 }
 0x186   : > { %v968_v61 = vrot.slane %v949_v19, 4  ;;  %v1490_v17 = vrot.slane %v2816_v30, 4  ;;  %v2827_v3 = vunpack.i.h.bf16 %v2825_v9  ;;  %v2826_v0 = vunpack.i.l.bf16 %v2825_v9 }
 0x187   : > { %v966_v18 = vrot.slane %v961_v42, 4  ;;  %v973_v22 = vsel %vm754_vm1, %v965_v13, %v972_v2  ;;  %v970_v24 = vrot.slane %v965_v13, 4  ;;  %v1422_v54 = vrot.slane %v3423_v33, 4 }
 0x188   : > { %2666 = vmatpush.xpose.msk.msrb.mxu3 %vm1694_vm2, %v1223_v63  ;;  %v969_v27 = vsel %vm754_vm1, %v961_v42, %v968_v61  ;;  %2673 = vmatmul.msk.f32.gmra.mxu1 %vm1694_vm2, %v973_v22  ;;  %v1478_v46 = vrot.slane %v3425_v35, 4  ;;  %v1432_v14 = vrot.slane %v2827_v3, 4  ;;  %v1435_v55 = vsel %vm754_vm1, %v2827_v3, %v1434_v4 }
 0x189   : > { %v967_v25 = vsel %vm754_vm1, %v966_v18, %v949_v19  ;;  %v1488_v49 = vrot.slane %v2826_v0, 4  ;;  %v1491_v16 = vsel %vm754_vm1, %v2826_v0, %v1490_v17  ;;  %v971_v40 = vsel %vm754_vm1, %v970_v24, %v953_v44 }
 0x18a   : > { %2663 = vmatmul.msk.f32.gmra.mxu0 %vm1694_vm2, %v969_v27  ;;  %v1443_v50 = vperm.slane %v1435_v55, %v3433_v45  ;;  %v1499_v26 = vperm.slane %v1491_v16, %v3433_v45  ;;  %v2822_v57 = vunpack.i.h.bf16 %v2820_v60  ;;  %v2821_v56 = vunpack.i.l.bf16 %v2820_v60 }
 0x18b   : > { %2658 = vmatmul.msk.f32.gmra.mxu3 %vm1694_vm2, %v967_v25  ;;  %v1433_v11 = vsel %vm754_vm1, %v1432_v14, %v2817_v6  ;;  %v1489_v15 = vsel %vm754_vm1, %v1488_v49, %v2816_v30 }
 0x18c   : > { %v1439_v1 = vperm.slane %v1433_v11, %v3433_v45  ;;  %v1456_v36 = vrot.slane %v1443_v50, 4  ;;  %v1495_v59 = vperm.slane %v1489_v15, %v3433_v45  ;;  %v1512_v5 = vrot.slane %v1499_v26, 4 }
 0x18d   : > { %v1420_v58 = vrot.slane %v2822_v57, 4  ;;  %v1423_v12 = vsel %vm754_vm1, %v2822_v57, %v1422_v54  ;;  %v1476_v51 = vrot.slane %v2821_v56, 4  ;;  %v1479_v53 = vsel %vm754_vm1, %v2821_v56, %v1478_v46 }
 0x18e   : > { %v1431_v34 = vperm.slane %v1423_v12, %v3433_v45  ;;  %v1487_v21 = vperm.slane %v1479_v53, %v3433_v45  ;;  %v1444_v38 = vrot.slane %v1439_v1, 4  ;;  %v1500_v28 = vrot.slane %v1495_v59, 4 }
 0x18f   : > { %v1421_v37 = vsel %vm754_vm1, %v1420_v58, %v3423_v33  ;;  %v1477_v52 = vsel %vm754_vm1, %v1476_v51, %v3425_v35 }
 0x190   : > { %v1427_v39 = vperm.slane %v1421_v37, %v3433_v45  ;;  %v1458_v23 = vrot.slane %v1431_v34, 4  ;;  %v1483_v20 = vperm.slane %v1477_v52, %v3433_v45  ;;  %v1514_v10 = vrot.slane %v1487_v21, 4 }
 0x191   : > { %v1457_v32 = vsel %vm754_vm1, %v1456_v36, %v1431_v34  ;;  %v1513_v63 = vsel %vm754_vm1, %v1512_v5, %v1487_v21 }
 0x192   : > { %v1446_v41 = vrot.slane %v1427_v39, 4  ;;  %v1502_v43 = vrot.slane %v1483_v20, 4  ;;  %v1445_v44 = vsel %vm754_vm1, %v1444_v38, %v1427_v39  ;;  %v1459_v33 = vsel %vm754_vm1, %v1443_v50, %v1458_v23 }
 0x193   : > { %2667 = vmatmul.msk.f32.vlgmr.msrb.gmra.mxu3 %vm1694_vm2, %v917_v8  ;;  %v1451_v62 = vperm.slane %v1445_v44, %v3453_v7  ;;  %v1463_v35 = vperm.slane %v1457_v32, %v3453_v7  ;;  %v1467_v19 = vperm.slane %v1459_v33, %v3453_v7  ;;  %v1501_v29 = vsel %vm754_vm1, %v1500_v28, %v1483_v20 }
 0x194   : > { %v1447_v13 = vsel %vm754_vm1, %v1439_v1, %v1446_v41  ;;  %v1503_v42 = vsel %vm754_vm1, %v1495_v59, %v1502_v43  ;;  %v1507_v2 = vperm.slane %v1501_v29, %v3453_v7  ;;  %v1515_v61 = vsel %vm754_vm1, %v1499_v26, %v1514_v10 }
 0x195   : > { %v1455_v18 = vperm.slane %v1447_v13, %v3453_v7  ;;  %v1468_v22 = vrot.slane %v1451_v62, 4  ;;  %v1472_v27 = vrot.slane %v1463_v35, 4  ;;  %v1474_v25 = vrot.slane %v1467_v19, 4 }
 0x196   : > { %v1511_v47 = vperm.slane %v1503_v42, %v3453_v7  ;;  %v1519_v48 = vperm.slane %v1513_v63, %v3453_v7  ;;  %v1523_v6 = vperm.slane %v1515_v61, %v3453_v7  ;;  %v1524_v30 = vrot.slane %v1507_v2, 4 }
 0x197   : > { %v1470_v8 = vrot.slane %v1455_v18, 4  ;;  %v1473_v4 = vsel %vm754_vm1, 0.0, %v1472_v27  ;;  %v1475_v17 = vsel %vm754_vm1, 0.0, %v1474_v25  ;;  %v1469_v24 = vsel %vm754_vm1, 0.0, %v1468_v22 }
 0x198   : > { %v1602_v9 = vrot.slane %v1475_v17, 4  ;;  %v1526_v3 = vrot.slane %v1511_v47, 4  ;;  %v1528_v0 = vrot.slane %v1519_v48, 4  ;;  %v1530_v54 = vrot.slane %v1523_v6, 4 }
 0x199   : > { %v1471_v46 = vsel %vm754_vm1, 0.0, %v1470_v8  ;;  %v1525_v14 = vsel %vm754_vm1, 0.0, %v1524_v30  ;;  %v1586_v55 = vsel %vm754_vm1, %v1470_v8, %v1451_v62  ;;  %v1597_v49 = vsel %vm754_vm1, %v1474_v25, %v1463_v35 }
 0x19a   : > { %v1591_v16 = vrot.slane %v1471_v46, 4  ;;  %v1529_v60 = vsel %vm754_vm1, 0.0, %v1528_v0  ;;  %v1531_v50 = vsel %vm754_vm1, 0.0, %v1530_v54  ;;  %v1640_v56 = vsel %vm754_vm1, %v1526_v3, %v1507_v2 }
 0x19b   : > { %2668 = vmatmul.msk.f32.gmra.mxu3 %vm1694_vm2, %v971_v40  ;;  %v1527_v40 = vsel %vm754_vm1, 0.0, %v1526_v3  ;;  %v1656_v57 = vrot.slane %v1531_v50, 4  ;;  %v1651_v11 = vsel %vm754_vm1, %v1530_v54, %v1519_v48  ;;  %v1644_v15 = vperm.slane %v1640_v56, %v3433_v45 }
 0x19c   : > { %v1645_v26 = vrot.slane %v1527_v40, 4  ;;  %v1655_v1 = vperm.slane %v1651_v11, %v3433_v45  ;;  %v1590_v36 = vperm.slane %v1586_v55, %v3433_v45  ;;  %v1592_v59 = vsel %vm754_vm1, %v1591_v16, %v1469_v24 }
 0x19d   : > { %v1657_v58 = vsel %vm754_vm1, %v1656_v57, %v1529_v60  ;;  %v1596_v12 = vperm.slane %v1592_v59, %v3433_v45  ;;  %v1601_v51 = vperm.slane %v1597_v49, %v3433_v45  ;;  %v1603_v21 = vsel %vm754_vm1, %v1602_v9, %v1473_v4 }
 0x19e   : > { %v1646_v5 = vsel %vm754_vm1, %v1645_v26, %v1525_v14  ;;  %v1661_v34 = vperm.slane %v1657_v58, %v3433_v45  ;;  %v1664_v38 = vrot.slane %v1644_v15, 4  ;;  %v1607_v37 = vperm.slane %v1603_v21, %v3433_v45 }
 0x19f   : > { %v1650_v53 = vperm.slane %v1646_v5, %v3433_v45  ;;  %v1608_v52 = vrot.slane %v1596_v12, 4  ;;  %v1676_v28 = vrot.slane %v1655_v1, 4  ;;  %v1610_v39 = vrot.slane %v1590_v36, 4 }
 0x1a0   : > { %v1674_v20 = vrot.slane %v1661_v34, 4  ;;  %v1622_v32 = vrot.slane %v1601_v51, 4  ;;  %v1620_v41 = vrot.slane %v1607_v37, 4 }
 0x1a1   : > { %v1662_v23 = vrot.slane %v1650_v53, 4  ;;  %v1665_v10 = vsel %vm754_vm1, %v1650_v53, %v1664_v38  ;;  %v1609_v63 = vsel %vm754_vm1, %v1608_v52, %v1590_v36  ;;  %v1677_v44 = vsel %vm754_vm1, %v1661_v34, %v1676_v28 }
 0x1a2   : > { %v1673_v43 = vperm.slane %v1665_v10, %v3453_v7  ;;  %v1675_v62 = vsel %vm754_vm1, %v1674_v20, %v1655_v1  ;;  %v1615_v35 = vperm.slane %v1609_v63, %v3453_v7  ;;  %v1685_v19 = vperm.slane %v1677_v44, %v3453_v7 }
 0x1a3   : > { %v1663_v33 = vsel %vm754_vm1, %v1662_v23, %v1644_v15  ;;  %v1681_v13 = vperm.slane %v1675_v62, %v3453_v7  ;;  %v1621_v42 = vsel %vm754_vm1, %v1620_v41, %v1601_v51  ;;  %v1611_v2 = vsel %vm754_vm1, %v1596_v12, %v1610_v39 }
 0x1a4   : > { %v1669_v29 = vperm.slane %v1663_v33, %v3453_v7  ;;  %v1627_v61 = vperm.slane %v1621_v42, %v3453_v7  ;;  %v1690_v18 = vrot.slane %v1685_v19, 4  ;;  %v1634_v22 = vrot.slane %v1615_v35, 4 }
 0x1a5   : > { %v1619_v27 = vperm.slane %v1611_v2, %v3453_v7  ;;  %v1686_v25 = vrot.slane %v1681_v13, 4  ;;  %v1623_v48 = vsel %vm754_vm1, %v1607_v37, %v1622_v32  ;;  %v1692_v6 = vrot.slane %v1673_v43, 4 }
 0x1a6   : > { %v1688_v47 = vrot.slane %v1669_v29, 4  ;;  %v1632_v30 = vrot.slane %v1627_v61, 4  ;;  %v1691_v8 = vsel %vm754_vm1, %v1690_v18, %v1673_v43  ;;  %v1635_v4 = vsel %vm754_vm1, %v1627_v61, %v1634_v22 }
 0x1a7   : > { %v1631_v17 = vperm.slane %v1623_v48, %v3453_v7  ;;  %v1687_v24 = vsel %vm754_vm1, %v1686_v25, %v1669_v29  ;;  %2037 = vmatpush.msra.mxu3 %v1691_v8  ;;  %v1693_v3 = vsel %vm754_vm1, %v1685_v19, %v1692_v6  ;;  %v1638_v0 = vrot.slane %v1619_v27, 4 }
 0x1a8   : > { %v1689_v9 = vsel %vm754_vm1, %v1681_v13, %v1688_v47  ;;  %1979 = vmatpush.msra.mxu2 %v1687_v24  ;;  %v1633_v54 = vsel %vm754_vm1, %v1632_v30, %v1615_v35  ;;  %2066 = vmatpush.msra.mxu1 %v1693_v3 }
 0x1a9   : > { %2008 = vmatpush.msra.mxu0 %v1689_v9  ;;  %v1636_v46 = vrot.slane %v1631_v17, 4  ;;  %v1639_v14 = vsel %vm754_vm1, %v1631_v17, %v1638_v0 }
 0x1aa   : > { %1980 = vmatpush.msra.mxu2 %v1633_v54  ;;  %2067 = vmatpush.msra.mxu1 %v1639_v14  ;;  %v1366_v54 = vrot.slane %v3421_v31, 4 }
 0x1ab   : > { %2009 = vmatpush.msra.mxu0 %v1635_v4  ;;  %v1637_v55 = vsel %vm754_vm1, %v1636_v46, %v1619_v27 }
 0x1ac   : > { %2038 = vmatpush.msra.mxu3 %v1637_v55 }
 0x1fd   : > { %v1841_v49 = vpop.f32.mrf.mxu1 }
 0x1fe   : > { %v1866_v16 = vsel %vm1847_vm3, %v1841_v49, -inf }
 0x1ff   : > { %v3917_v40 = vpop.f32.mrf.mxu0  ;;  %1867 = vmax.xlane.f32.xlu2 %v1866_v16 }
 0x200   : > { %v1854_v60 = vsel %vm1847_vm3, %v3917_v40, -inf }
 0x201   : > { %1855 = vmax.xlane.f32.xlu1 %v1854_v60 }
 0x205   : > { %v3921_v50 = vpop.f32.mrf.mxu1 }
 0x206   : > { %v1727_v26 = vpop.f32.mrf.mxu3  ;;  %v1869_v57 = vsel %vm1847_vm3, %v3921_v50, -inf }
 0x207   : > { %v1768_v56 = vpop.f32.mrf.mxu0  ;;  %v1848_v11 = vsel %vm1847_vm3, %v1727_v26, -inf  ;;  %1870 = vmax.xlane.f32.xlu2 %v1869_v57 }
 0x208   : > { %v1857_v15 = vsel %vm1847_vm3, %v1768_v56, -inf }
 0x209   : > { %1858 = vmax.xlane.f32.xlu0 %v1857_v15  ;;  %1849 = vmax.xlane.f32.xlu1 %v1848_v11 }
 0x20e   : > { %v1730_v1 = vpop.f32.mrf.mxu3 }
 0x20f   : > { %v1851_v36 = vsel %vm1847_vm3, %v1730_v1, -inf }
 0x211   : > { %1852 = vmax.xlane.f32.xlu0 %v1851_v36 }
 0x216   : > { %v1803_v59 = vpop.f32.mrf.mxu3 }
 0x217   : > { %v1860_v5 = vsel %vm1847_vm3, %v1803_v59, -inf }
 0x219   : > { %1861 = vmax.xlane.f32.xlu0 %v1860_v5 }
 0x21e   : > { %v1806_v58 = vpop.f32.mrf.mxu3 }
 0x21f   : > { %v1863_v12 = vsel %vm1847_vm3, %v1806_v58, -inf }
 0x220   : > { %1864 = vmax.xlane.f32.xlu2 %v1863_v12 }
 0x222   : > { %1337 = vrot.lane.b32.xlu1 %v3421_v31, %s3138_s18 }
 0x22d   : > { %1346 = vrot.lane.b32.xlu0 %v3421_v31, %s3137_s24 }
 0x238   : > { %1355 = vrot.lane.b32.xlu2 %v3421_v31, %s3136_s26  ;;  %s2642_s26 = sshll.u32 %s600_s28, 4 }
 0x239   : > { %s602_s15 = scalar_lea.vmem [#allocation13], %s2642_s26 }
 0x23a   : > { %s2489_s23 = sshll.u32 %s602_s15, 4  ;;  %s2490_s23 = int_to_ptr.vmem [resolvable:$true] %s2489_s23 }
 0x272   : > { %v1868_v37 = vpop.xlane.xlu2 %1867 }
 0x273   : > { %v1878_v33 = vsub.f32 %v1841_v49, %v1868_v37 }
 0x274   : > { %v1856_v51 = vpop.xlane.xlu1 %1855 }
 0x275   : > { %v1892_v19 = vmul.f32 1.442695, %v1878_v33  ;;  %v1874_v2 = vsub.f32 %v3917_v40, %v1856_v51 }
 0x277   : > { %v1884_v48 = vmul.f32 1.442695, %v1874_v2 }
 0x27a   : > { %v1871_v32 = vpop.xlane.xlu2 %1870 }
 0x27b   : > { %v1879_v22 = vsub.f32 %v3921_v50, %v1871_v32 }
 0x27c   : > { %v1859_v53 = vpop.xlane.xlu0 %1858  ;;  %v1850_v34 = vpop.xlane.xlu1 %1849 }
 0x27d   : > { %v1872_v21 = vsub.f32 %v1727_v26, %v1850_v34  ;;  %v1875_v20 = vsub.f32 %v1768_v56, %v1859_v53  ;;  %v1894_v30 = vmul.f32 1.442695, %v1879_v22 }
 0x27f   : > { %v1880_v38 = vmul.f32 1.442695, %v1872_v21  ;;  %v1886_v63 = vmul.f32 1.442695, %v1875_v20 }
 0x281   : > { %2834 = vpow2.f32 %v1880_v38 }
 0x284   : > { %v1853_v52 = vpop.xlane.xlu0 %1852 }
 0x285   : > { %v1873_v28 = vsub.f32 %v1730_v1, %v1853_v52 }
 0x287   : > { %v1882_v39 = vmul.f32 1.442695, %v1873_v28  ;;  %v3936_v23 = vpop.eup %2834 }
 0x288   : > { %v1896_v10 = vsel %vm1847_vm3, %v3936_v23, 0.0 }
 0x289   : > { %2836 = vpow2.f32 %v1882_v39  ;;  %1897 = vadd.xlane.f32.xlu0 %v1896_v10 }
 0x28a   : > { %2838 = vpow2.f32 %v1886_v63 }
 0x28c   : > { %v1862_v41 = vpop.xlane.xlu0 %1861 }
 0x28d   : > { %v1876_v43 = vsub.f32 %v1803_v59, %v1862_v41 }
 0x28f   : > { %v3940_v44 = vpop.eup %2836  ;;  %v1888_v62 = vmul.f32 1.442695, %v1876_v43 }
 0x290   : > { %v1899_v35 = vsel %vm1847_vm3, %v3940_v44, 0.0  ;;  %v3944_v42 = vpop.eup %2838 }
 0x291   : > { %2840 = vpow2.f32 %v1888_v62  ;;  %1900 = vadd.xlane.f32.xlu0 %v1899_v35  ;;  %v1905_v47 = vsel %vm1847_vm3, %v3944_v42, 0.0 }
 0x292   : > { %2842 = vpow2.f32 %v1892_v19 }
 0x293   : > { %v1865_v29 = vpop.xlane.xlu2 %1864 }
 0x294   : > { %v1877_v13 = vsub.f32 %v1806_v58, %v1865_v29  ;;  %v1338_v27 = vpop.permute.xlu1 %1337 }
 0x295   : > { %v1378_v6 = vrot.slane %v1338_v27, 4 }
 0x296   : > { %v1890_v61 = vmul.f32 1.442695, %v1877_v13 }
 0x297   : > { %v3947_v18 = vpop.eup %2840 }
 0x298   : > { %2844 = vpow2.f32 %v1890_v61  ;;  %v1908_v25 = vsel %vm1847_vm3, %v3947_v18, 0.0  ;;  %v3955_v24 = vpop.eup %2842 }
 0x299   : > { %1909 = vadd.xlane.f32.xlu1 %v1908_v25  ;;  %1906 = vadd.xlane.f32.xlu0 %v1905_v47  ;;  %2846 = vpow2.f32 %v1884_v48  ;;  %v1914_v60 = vsel %vm1847_vm3, %v3955_v24, 0.0 }
 0x29a   : > { %2848 = vpow2.f32 %v1894_v30 }
 0x29b   : > { %v1356_v8 = vpop.permute.xlu2 %1355 }
 0x29c   : > { %v1376_v4 = vrot.slane %v1356_v8, 4  ;;  %v1379_v17 = vsel %vm754_vm1, %v1356_v8, %v1378_v6 }
 0x29d   : > { %v1387_v9 = vperm.slane %v1379_v17, %v3433_v45 }
 0x29e   : > { %v3958_v3 = vpop.eup %2844  ;;  %v1377_v0 = vsel %vm754_vm1, %v1376_v4, %v1338_v27 }
 0x29f   : > { %v1383_v46 = vperm.slane %v1377_v0, %v3433_v45  ;;  %v1400_v14 = vrot.slane %v1387_v9, 4  ;;  %v1347_v55 = vpop.permute.xlu0 %1346  ;;  %v1911_v49 = vsel %vm1847_vm3, %v3958_v3, 0.0  ;;  %v3973_v1 = vpop.eup %2846 }
 0x2a0   : > { %v1364_v16 = vrot.slane %v1347_v55, 4  ;;  %v1367_v40 = vsel %vm754_vm1, %v1347_v55, %v1366_v54  ;;  %1912 = vadd.xlane.f32.xlu2 %v1911_v49  ;;  %v3976_v59 = vpop.eup %2848  ;;  %v1902_v34 = vsel %vm1847_vm3, %v3973_v1, 0.0 }
 0x2a1   : > { %v1388_v50 = vrot.slane %v1383_v46, 4  ;;  %v1375_v26 = vperm.slane %v1367_v40, %v3433_v45  ;;  %1915 = vadd.xlane.f32.xlu1 %v1914_v60  ;;  %v1917_v52 = vsel %vm1847_vm3, %v3976_v59, 0.0 }
 0x2a2   : > { %v1365_v57 = vsel %vm754_vm1, %v1364_v16, %v3421_v31 }
 0x2a3   : > { %v1371_v56 = vperm.slane %v1365_v57, %v3433_v45  ;;  %v1401_v11 = vsel %vm754_vm1, %v1400_v14, %v1375_v26  ;;  %v1402_v15 = vrot.slane %v1375_v26, 4 }
 0x2a4   : > { %v1407_v36 = vperm.slane %v1401_v11, %v3453_v7 }
 0x2a5   : > { %v1389_v5 = vsel %vm754_vm1, %v1388_v50, %v1371_v56  ;;  %v1390_v58 = vrot.slane %v1371_v56, 4  ;;  %v1403_v12 = vsel %vm754_vm1, %v1387_v9, %v1402_v15 }
 0x2a6   : > { %v1395_v51 = vperm.slane %v1389_v5, %v3453_v7  ;;  %v1411_v31 = vperm.slane %v1403_v12, %v3453_v7  ;;  %v1416_v38 = vrot.slane %v1407_v36, 4 }
 0x2a7   : > { %v1391_v53 = vsel %vm754_vm1, %v1383_v46, %v1390_v58 }
 0x2a8   : > { %v1399_v21 = vperm.slane %v1391_v53, %v3453_v7  ;;  %v1418_v37 = vrot.slane %v1411_v31, 4  ;;  %1903 = vadd.xlane.f32.xlu2 %v1902_v34  ;;  %v1412_v28 = vrot.slane %v1395_v51, 4  ;;  %v1417_v43 = vsel %vm754_vm1, 0.0, %v1416_v38 }
 0x2a9   : > { %1918 = vadd.xlane.f32.xlu1 %v1917_v52 }
 0x2aa   : > { %v1414_v39 = vrot.slane %v1399_v21, 4  ;;  %v1419_v20 = vsel %vm754_vm1, 0.0, %v1418_v37  ;;  %v1543_v10 = vsel %vm754_vm1, %v1418_v37, %v1407_v36  ;;  %v1413_v13 = vsel %vm754_vm1, 0.0, %v1412_v28 }
 0x2ab   : > { %v1547_v32 = vperm.slane %v1543_v10, %v3433_v45  ;;  %v1548_v63 = vrot.slane %v1419_v20, 4 }
 0x2ac   : > { %v1415_v41 = vsel %vm754_vm1, 0.0, %v1414_v39  ;;  %v1532_v33 = vsel %vm754_vm1, %v1414_v39, %v1395_v51 }
 0x2ad   : > { %v1549_v62 = vsel %vm754_vm1, %v1548_v63, %v1417_v43  ;;  %v1536_v35 = vperm.slane %v1532_v33, %v3433_v45  ;;  %v1537_v19 = vrot.slane %v1415_v41, 4  ;;  %v1568_v29 = vrot.slane %v1547_v32, 4 }
 0x2ae   : > { %v1553_v2 = vperm.slane %v1549_v62, %v3433_v45 }
 0x2af   : > { %v1538_v61 = vsel %vm754_vm1, %v1537_v19, %v1413_v13  ;;  %v1556_v22 = vrot.slane %v1536_v35, 4 }
 0x2b0   : > { %v1542_v27 = vperm.slane %v1538_v61, %v3433_v45  ;;  %v1569_v25 = vsel %vm754_vm1, %v1553_v2, %v1568_v29  ;;  %v1566_v47 = vrot.slane %v1553_v2, 4 }
 0x2b1   : > { %v1577_v48 = vperm.slane %v1569_v25, %v3453_v7 }
 0x2b2   : > { %v1557_v6 = vsel %vm754_vm1, %v1542_v27, %v1556_v22  ;;  %v1554_v30 = vrot.slane %v1542_v27, 4  ;;  %v1567_v8 = vsel %vm754_vm1, %v1566_v47, %v1547_v32 }
 0x2b3   : > { %v1565_v4 = vperm.slane %v1557_v6, %v3453_v7  ;;  %v1582_v17 = vrot.slane %v1577_v48, 4  ;;  %v1573_v9 = vperm.slane %v1567_v8, %v3453_v7 }
 0x2b4   : > { %v1555_v0 = vsel %vm754_vm1, %v1554_v30, %v1536_v35 }
 0x2b5   : > { %v1583_v54 = vsel %vm754_vm1, %v1582_v17, %v1565_v4  ;;  %v1561_v46 = vperm.slane %v1555_v0, %v3453_v7  ;;  %v1578_v14 = vrot.slane %v1573_v9, 4  ;;  %v1584_v55 = vrot.slane %v1565_v4, 4 }
 0x2b6   : > { %2039 = vmatpush.msra.mxu3 %v1583_v54 }
 0x2b7   : > { %v1579_v49 = vsel %vm754_vm1, %v1578_v14, %v1561_v46  ;;  %v1585_v16 = vsel %vm754_vm1, %v1577_v48, %v1584_v55  ;;  %v1580_v40 = vrot.slane %v1561_v46, 4 }
 0x2b8   : > { %1981 = vmatpush.msra.mxu2 %v1579_v49  ;;  %2068 = vmatpush.msra.mxu1 %v1585_v16 }
 0x2b9   : > { %v1581_v60 = vsel %vm754_vm1, %v1573_v9, %v1580_v40 }
 0x2ba   : > { %2010 = vmatpush.msra.mxu0 %v1581_v60 }
 0x2fc   : > { %v1898_v50 = vpop.xlane.xlu0 %1897 }
 0x2fd   : > { %2850 = vrcp.f32 %v1898_v50 }
 0x303   : > { %v2851_v26 = vpop.eup %2850 }
 0x304   : > { %v1928_v57 = vmul.f32 %v2851_v26, %v1898_v50  ;;  %v1901_v56 = vpop.xlane.xlu0 %1900 }
 0x305   : > { %2852 = vrcp.f32 %v1901_v56 }
 0x306   : > { %v1936_v11 = vsub.f32 2.0, %v1928_v57 }
 0x308   : > { %v1944_v15 = vmul.f32 %v2851_v26, %v1936_v11 }
 0x30a   : > { %v1952_v36 = vmul.f32 %v3936_v23, %v1944_v15 }
 0x30b   : > { %v2853_v5 = vpop.eup %2852 }
 0x30c   : > { %v1910_v58 = vpop.xlane.xlu1 %1909  ;;  %v1929_v12 = vmul.f32 %v2853_v5, %v1901_v56  ;;  %2674 = vmatmul.msk.f32.vlgmr.msra.gmra.mxu2 %vm1847_vm3, %v1952_v36  ;;  %v1907_v28 = vpop.xlane.xlu0 %1906 }
 0x30d   : > { %2854 = vrcp.f32 %v1910_v58 }
 0x30e   : > { %v1937_v51 = vsub.f32 2.0, %v1929_v12 }
 0x310   : > { %v1945_v31 = vmul.f32 %v2853_v5, %v1937_v51 }
 0x312   : > { %v1953_v34 = vmul.f32 %v3940_v44, %v1945_v31 }
 0x313   : > { %v2855_v53 = vpop.eup %2854  ;;  %v1913_v21 = vpop.xlane.xlu2 %1912 }
 0x314   : > { %v1932_v38 = vmul.f32 %v2855_v53, %v1910_v58  ;;  %v1916_v37 = vpop.xlane.xlu1 %1915  ;;  %2856 = vrcp.f32 %v1913_v21  ;;  %2675 = vmatmul.msk.f32.gmra.mxu2 %vm1847_vm3, %v1953_v34 }
 0x315   : > { %2858 = vrcp.f32 %v1916_v37 }
 0x316   : > { %v1940_v52 = vsub.f32 2.0, %v1932_v38  ;;  %2860 = vrcp.f32 %v1907_v28 }
 0x318   : > { %v1948_v23 = vmul.f32 %v2855_v53, %v1940_v52 }
 0x31a   : > { %v2857_v39 = vpop.eup %2856  ;;  %v1956_v20 = vmul.f32 %v3947_v18, %v1948_v23 }
 0x31b   : > { %v2859_v10 = vpop.eup %2858  ;;  %v1933_v32 = vmul.f32 %v2857_v39, %v1913_v21  ;;  %v1904_v63 = vpop.xlane.xlu2 %1903 }
 0x31c   : > { %v1934_v41 = vmul.f32 %v2859_v10, %v1916_v37  ;;  %v1919_v43 = vpop.xlane.xlu1 %1918  ;;  %2678 = vmatmul.msk.f32.vlgmr.msra.gmra.mxu3 %vm1847_vm3, %v1956_v20  ;;  %2862 = vrcp.f32 %v1904_v63  ;;  %v2861_v19 = vpop.eup %2860 }
 0x31d   : > { %v1941_v44 = vsub.f32 2.0, %v1933_v32  ;;  %2864 = vrcp.f32 %v1919_v43  ;;  %v1931_v27 = vmul.f32 %v2861_v19, %v1907_v28 }
 0x31e   : > { %v1942_v33 = vsub.f32 2.0, %v1934_v41 }
 0x31f   : > { %v1949_v62 = vmul.f32 %v2857_v39, %v1941_v44  ;;  %v1939_v30 = vsub.f32 2.0, %v1931_v27 }
 0x320   : > { %v1950_v35 = vmul.f32 %v2859_v10, %v1942_v33 }
 0x321   : > { %v1957_v29 = vmul.f32 %v3958_v3, %v1949_v62 }
 0x322   : > { %v2863_v13 = vpop.eup %2862  ;;  %v1958_v18 = vmul.f32 %v3955_v24, %v1950_v35  ;;  %v1947_v24 = vmul.f32 %v2861_v19, %v1939_v30 }
 0x323   : > { %v2865_v2 = vpop.eup %2864  ;;  %v1930_v61 = vmul.f32 %v2863_v13, %v1904_v63 }
 0x324   : > { %v1935_v22 = vmul.f32 %v2865_v2, %v1919_v43  ;;  %2679 = vmatmul.msk.f32.gmra.mxu3 %vm1847_vm3, %v1957_v29  ;;  %2680 = vmatmul.msk.f32.vlgmr.msra.gmra.mxu1 %vm1847_vm3, %v1958_v18  ;;  %v1955_v4 = vmul.f32 %v3944_v42, %v1947_v24 }
 0x325   : > { %v1938_v25 = vsub.f32 2.0, %v1930_v61 }
 0x326   : > { %v1943_v47 = vsub.f32 2.0, %v1935_v22 }
 0x327   : > { %v1946_v48 = vmul.f32 %v2863_v13, %v1938_v25 }
 0x328   : > { %v1951_v6 = vmul.f32 %v2865_v2, %v1943_v47 }
 0x329   : > { %v1954_v8 = vmul.f32 %v3973_v1, %v1946_v48 }
 0x32a   : > { %v1959_v3 = vmul.f32 %v3976_v59, %v1951_v6 }
 0x32b   : > { %2676 = vmatmul.msk.f32.vlgmr.msra.gmra.mxu0 %vm1847_vm3, %v1954_v8 }
 0x32c   : > { %2681 = vmatmul.msk.f32.gmra.mxu1 %vm1847_vm3, %v1959_v3 }
 0x333   : > { %2677 = vmatmul.msk.f32.gmra.mxu0 %vm1847_vm3, %v1955_v4 }
 0x38f   : > { %v1983_v17 = vpop.f32.mrf.mxu2 }
 0x390   : > { %v2078_v54 = vrot.slane %v1983_v17, 4 }
 0x397   : > { %v1986_v46 = vpop.f32.mrf.mxu2 }
 0x398   : > { %v2134_v59 = vrot.slane %v1986_v46, 4 }
 0x39f   : > { %v2041_v9 = vpop.f32.mrf.mxu3 }
 0x3a0   : > { %v2076_v0 = vrot.slane %v2041_v9, 4  ;;  %v2079_v1 = vsel %vm754_vm1, %v2041_v9, %v2078_v54 }
 0x3a1   : > { %v2070_v55 = vpop.f32.mrf.mxu1  ;;  %v2087_v16 = vperm.slane %v2079_v1, %v3433_v45 }
 0x3a2   : > { %v2077_v14 = vsel %vm754_vm1, %v2076_v0, %v1983_v17  ;;  %v2088_v40 = vrot.slane %v2070_v55, 4 }
 0x3a3   : > { %v2083_v49 = vperm.slane %v2077_v14, %v3433_v45  ;;  %v2114_v5 = vrot.slane %v2087_v16, 4 }
 0x3a5   : > { %v2102_v11 = vrot.slane %v2083_v49, 4 }
 0x3a7   : > { %v2044_v60 = vpop.f32.mrf.mxu3 }
 0x3a8   : > { %v2132_v42 = vrot.slane %v2044_v60, 4  ;;  %v2135_v50 = vsel %vm754_vm1, %v2044_v60, %v2134_v59  ;;  %v2012_v26 = vpop.f32.mrf.mxu0 }
 0x3a9   : > { %v2089_v57 = vsel %vm754_vm1, %v2088_v40, %v2012_v26  ;;  %v2090_v56 = vrot.slane %v2012_v26, 4  ;;  %v2143_v58 = vperm.slane %v2135_v50, %v3433_v45  ;;  %v2073_v38 = vpop.f32.mrf.mxu1 }
 0x3aa   : > { %v2133_v15 = vsel %vm754_vm1, %v2132_v42, %v1986_v46  ;;  %v2095_v36 = vperm.slane %v2089_v57, %v3433_v45  ;;  %v2144_v41 = vrot.slane %v2073_v38, 4 }
 0x3ab   : > { %v2091_v12 = vsel %vm754_vm1, %v2070_v55, %v2090_v56  ;;  %v2139_v51 = vperm.slane %v2133_v15, %v3433_v45  ;;  %v2170_v32 = vrot.slane %v2143_v58, 4 }
 0x3ac   : > { %v2099_v31 = vperm.slane %v2091_v12, %v3433_v45  ;;  %v2100_v53 = vrot.slane %v2095_v36, 4  ;;  %v2103_v34 = vsel %vm754_vm1, %v2095_v36, %v2102_v11 }
 0x3ad   : > { %v2111_v21 = vperm.slane %v2103_v34, %v3453_v7  ;;  %v2158_v10 = vrot.slane %v2139_v51, 4 }
 0x3ae   : > { %v2101_v37 = vsel %vm754_vm1, %v2100_v53, %v2083_v49  ;;  %v2112_v52 = vrot.slane %v2099_v31, 4  ;;  %v2115_v23 = vsel %vm754_vm1, %v2099_v31, %v2114_v5 }
 0x3af   : > { %v2107_v28 = vperm.slane %v2101_v37, %v3453_v7  ;;  %v2123_v39 = vperm.slane %v2115_v23, %v3453_v7  ;;  %v2126_v20 = vrot.slane %v2111_v21, 4 }
 0x3b0   : > { %v2113_v63 = vsel %vm754_vm1, %v2112_v52, %v2087_v16  ;;  %v2015_v43 = vpop.f32.mrf.mxu0 }
 0x3b1   : > { %v2119_v44 = vperm.slane %v2113_v63, %v3453_v7  ;;  %v2124_v33 = vrot.slane %v2107_v28, 4  ;;  %v2127_v62 = vsel %vm754_vm1, 0.0, %v2126_v20  ;;  %v2130_v35 = vrot.slane %v2123_v39, 4 }
 0x3b2   : > { %v2188_v19 = vsel %vm754_vm1, %v2126_v20, %v2107_v28  ;;  %v2193_v29 = vrot.slane %v2127_v62, 4  ;;  %v2145_v13 = vsel %vm754_vm1, %v2144_v41, %v2015_v43  ;;  %v2146_v18 = vrot.slane %v2015_v43, 4 }
 0x3b3   : > { %v2125_v2 = vsel %vm754_vm1, 0.0, %v2124_v33  ;;  %v2128_v61 = vrot.slane %v2119_v44, 4  ;;  %v2131_v22 = vsel %vm754_vm1, 0.0, %v2130_v35  ;;  %v2192_v27 = vperm.slane %v2188_v19, %v3433_v45 }
 0x3b4   : > { %v2204_v25 = vrot.slane %v2131_v22, 4  ;;  %v2147_v47 = vsel %vm754_vm1, %v2073_v38, %v2146_v18  ;;  %v2151_v48 = vperm.slane %v2145_v13, %v3433_v45  ;;  %v2194_v6 = vsel %vm754_vm1, %v2193_v29, %v2125_v2 }
 0x3b5   : > { %v2155_v30 = vperm.slane %v2147_v47, %v3433_v45  ;;  %v2129_v8 = vsel %vm754_vm1, 0.0, %v2128_v61  ;;  %v2198_v3 = vperm.slane %v2194_v6, %v3433_v45  ;;  %v2199_v24 = vsel %vm754_vm1, %v2130_v35, %v2119_v44 }
 0x3b6   : > { %v2156_v4 = vrot.slane %v2151_v48, 4  ;;  %v2159_v17 = vsel %vm754_vm1, %v2151_v48, %v2158_v10  ;;  %v2203_v9 = vperm.slane %v2199_v24, %v3433_v45  ;;  %v2205_v0 = vsel %vm754_vm1, %v2204_v25, %v2129_v8 }
 0x3b7   : > { %v2167_v54 = vperm.slane %v2159_v17, %v3453_v7  ;;  %v2168_v46 = vrot.slane %v2155_v30, 4  ;;  %v2171_v14 = vsel %vm754_vm1, %v2155_v30, %v2170_v32  ;;  %v2209_v55 = vperm.slane %v2205_v0, %v3433_v45 }
 0x3b8   : > { %v2157_v1 = vsel %vm754_vm1, %v2156_v4, %v2139_v51  ;;  %v2179_v59 = vperm.slane %v2171_v14, %v3453_v7  ;;  %v2212_v49 = vrot.slane %v2192_v27, 4  ;;  %v2224_v16 = vrot.slane %v2203_v9, 4 }
 0x3b9   : > { %v2163_v40 = vperm.slane %v2157_v1, %v3453_v7  ;;  %v2169_v60 = vsel %vm754_vm1, %v2168_v46, %v2143_v58  ;;  %v2182_v42 = vrot.slane %v2167_v54, 4  ;;  %v2210_v50 = vrot.slane %v2198_v3, 4  ;;  %v2330_v1 = vld [vmem:[#allocation8 + $0x18] sm:$0xff] }
 0x3ba   : > { %v2175_v26 = vperm.slane %v2169_v60, %v3453_v7  ;;  %v2186_v57 = vrot.slane %v2179_v59, 4  ;;  %v2213_v56 = vsel %vm754_vm1, %v2198_v3, %v2212_v49  ;;  %v2225_v11 = vsel %vm754_vm1, %v2209_v55, %v2224_v16  ;;  %v2329_v59 = vld [vmem:[#allocation8 + $0x10] sm:$0xff]  ;;  %2353 = vmatpush.msrb.mxu2 %v2330_v1  ;;  %v2327_v49 = vld [vmem:[#allocation8] sm:$0xff]  ;;  %v2367_v16 = vld [vmem:[#allocation10 + $0x18] sm:$0xff] }
 0x3bb   : > { %v2180_v15 = vrot.slane %v2163_v40, 4  ;;  %v2183_v36 = vsel %vm754_vm1, 0.0, %v2182_v42  ;;  %v2242_v5 = vsel %vm754_vm1, %v2182_v42, %v2163_v40  ;;  %v2221_v12 = vperm.slane %v2213_v56, %v3453_v7  ;;  %v2366_v40 = vld [vmem:[#allocation10 + $0x10] sm:$0xff]  ;;  %v2371_v60 = vld [vmem:[#allocation11 + $0x18] sm:$0xff]  ;;  %2413 = vmatpush.msrb.mxu3 %v2367_v16  ;;  %v2368_v56 = vld [vmem:[#allocation11] sm:$0xff] }
 0x3bc   : > { %v2184_v51 = vrot.slane %v2175_v26, 4  ;;  %v2187_v31 = vsel %vm754_vm1, 0.0, %v2186_v57  ;;  %v2246_v58 = vperm.slane %v2242_v5, %v3433_v45  ;;  %v2247_v53 = vrot.slane %v2183_v36, 4  ;;  %2354 = vmatpush.msrb.mxu2 %v2329_v59  ;;  %2390 = vmatpush.msrb.mxu0 %v2371_v60  ;;  %v2370_v42 = vld [vmem:[#allocation11 + $0x10] sm:$0xff]  ;;  %v2867_v36 = vld [vmem:[%s3364_s27 + $0x8] sm:$0xff] }
 0x3bd   : > { %v2181_v34 = vsel %vm754_vm1, 0.0, %v2180_v15  ;;  %v2258_v21 = vrot.slane %v2187_v31, 4  ;;  %v2233_v38 = vperm.slane %v2225_v11, %v3453_v7  ;;  %v2240_v37 = vrot.slane %v2221_v12, 4  ;;  %2414 = vmatpush.msrb.mxu3 %v2366_v40  ;;  %v2866_v11 = vld [vmem:[%s3364_s27] sm:$0xff]  ;;  %s2477_s27 = scalar_lea.sflag [#allocation4], %s600_s28 }
 0x3be   : > { %v2211_v52 = vsel %vm754_vm1, %v2210_v50, %v2192_v27  ;;  %v2222_v23 = vrot.slane %v2209_v55, 4  ;;  %v2185_v28 = vsel %vm754_vm1, 0.0, %v2184_v51  ;;  %v2248_v39 = vsel %vm754_vm1, %v2247_v53, %v2181_v34  ;;  %v2365_v50 = vld [vmem:[#allocation10 + $0x8] sm:$0xff]  ;;  %2391 = vmatpush.msrb.mxu0 %v2370_v42 }
 0x3bf   : > { %v2241_v20 = vsel %vm754_vm1, %v2233_v38, %v2240_v37  ;;  %v2238_v10 = vrot.slane %v2233_v38, 4  ;;  %v2217_v32 = vperm.slane %v2211_v52, %v3453_v7  ;;  %v2252_v63 = vperm.slane %v2248_v39, %v3433_v45  ;;  %2415 = vmatpush.msrb.mxu3 %v2365_v50  ;;  %v2437_v39 = vld [vmem:[%s4205_s13 + $0x28] sm:$0xff] }
 0x3c0   : > { %2314 = vrot.lane.b32.xlu0 %v2241_v20, %s3141_s30  ;;  %v2223_v41 = vsel %vm754_vm1, %v2222_v23, %v2203_v9  ;;  %v2253_v43 = vsel %vm754_vm1, %v2186_v57, %v2175_v26  ;;  %v2259_v44 = vsel %vm754_vm1, %v2258_v21, %v2185_v28  ;;  %v2266_v33 = vrot.slane %v2246_v58, 4  ;;  %v2369_v26 = vld [vmem:[#allocation11 + $0x8] sm:$0xff]  ;;  %v2364_v57 = vld [vmem:[#allocation10] sm:$0xff]  ;;  %v2439_v23 = vld [vmem:[%s4205_s13 + $0x38] sm:$0xff] }
 0x3c1   : > { %v2239_v62 = vsel %vm754_vm1, %v2238_v10, %v2221_v12  ;;  %v2229_v35 = vperm.slane %v2223_v41, %v3453_v7  ;;  %v2236_v19 = vrot.slane %v2217_v32, 4  ;;  %v2257_v29 = vperm.slane %v2253_v43, %v3433_v45  ;;  %2392 = vmatpush.msrb.mxu0 %v2369_v26  ;;  %2416 = vmatpush.msrb.mxu3 %v2364_v57  ;;  %v2438_v28 = vld [vmem:[%s4205_s13 + $0x30] sm:$0xff]  ;;  %v2436_v20 = vld [vmem:[%s4205_s13 + $0x20] sm:$0xff]  ;;  %v2435_v10 = vld [vmem:[%s4205_s13 + $0x18] sm:$0xff] }
 0x3c2   : > { %2306 = vrot.lane.b32.xlu1 %v2239_v62, %s3142_s16  ;;  %v2263_v13 = vperm.slane %v2259_v44, %v3433_v45  ;;  %v2267_v18 = vsel %vm754_vm1, %v2252_v63, %v2266_v33  ;;  %v2264_v2 = vrot.slane %v2252_v63, 4  ;;  %2686 = vmatmul.msk.f32.vlgmr.msrb.gmra.mxu3 %vm626_vm0, %v2866_v11  ;;  %v2434_v33 = vld [vmem:[%s4205_s13 + $0x10] sm:$0xff]  ;;  %v2433_v62 = vld [vmem:[%s4205_s13 + $0x8] sm:$0xff] }
 0x3c3   : > { %v2234_v61 = vrot.slane %v2229_v35, 4  ;;  %v2237_v22 = vsel %vm754_vm1, %v2229_v35, %v2236_v19  ;;  %v2275_v27 = vperm.slane %v2267_v18, %v3453_v7  ;;  %v2278_v25 = vrot.slane %v2257_v29, 4  ;;  %2393 = vmatpush.msrb.mxu0 %v2368_v56  ;;  %2459 = vmatpush.msrb.mxu1 %v2439_v23  ;;  %v2432_v35 = vld [vmem:[%s4205_s13] sm:$0xff] }
 0x3c4   : > { %2298 = vrot.lane.b32.xlu2 %v2237_v22, %s3143_s17  ;;  %v2265_v47 = vsel %vm754_vm1, %v2264_v2, %v2246_v58  ;;  %v2276_v48 = vrot.slane %v2263_v13, 4 }
 0x3c5   : > { %v2279_v6 = vsel %vm754_vm1, %v2263_v13, %v2278_v25  ;;  %v2294_v30 = vrot.slane %v2275_v27, 4  ;;  %v2271_v45 = vperm.slane %v2265_v47, %v3453_v7  ;;  %v2235_v8 = vsel %vm754_vm1, %v2234_v61, %v2217_v32  ;;  %2460 = vmatpush.msrb.mxu1 %v2438_v28  ;;  %v2831_v32 = vld [vmem:[%s4201_s9] ss:$0 sm:$0xff] }
 0x3c6   : > { %v2287_v3 = vperm.slane %v2279_v6, %v3453_v7  ;;  %v2277_v24 = vsel %vm754_vm1, %v2276_v48, %v2257_v29  ;;  %v2832_v29 = vld [vmem:[%s4204_s12] ss:$0 sm:$0xff] }
 0x3c7   : > { %v2283_v4 = vperm.slane %v2277_v24, %v3453_v7  ;;  %v2290_v17 = vrot.slane %v2271_v45, 4  ;;  %v2328_v7 = vld [vmem:[#allocation8 + $0x8] sm:$0xff]  ;;  %2461 = vmatpush.msrb.mxu1 %v2437_v39  ;;  %v2833_v6 = vld [vmem:[%s4206_s14] ss:$0 sm:$0xff] }
 0x3c8   : > { %v2292_v9 = vrot.slane %v2287_v3, 4  ;;  %v2295_v0 = vsel %vm754_vm1, %v2287_v3, %v2294_v30  ;;  %2355 = vmatpush.msrb.mxu2 %v2328_v7 }
 0x3c9   : > { %v2288_v54 = vrot.slane %v2283_v4, 4  ;;  %v2291_v46 = vsel %vm754_vm1, %v2283_v4, %v2290_v17  ;;  %2462 = vmatpush.msrb.mxu1 %v2436_v20 }
 0x3ca   : > { %2316 = vrot.lane.b32.xlu1 %v2295_v0, %s3141_s30  ;;  %v2293_v14 = vsel %vm754_vm1, %v2292_v9, %v2275_v27  ;;  %2356 = vmatpush.msrb.mxu2 %v2327_v49 }
 0x3cb   : > { %2308 = vrot.lane.b32.xlu0 %v2293_v14, %s3142_s16  ;;  %v2289_v55 = vsel %vm754_vm1, %v2288_v54, %v2271_v45  ;;  %2687 = vmatmul.msk.f32.gmra.mxu3 %vm626_vm0, %v2867_v36  ;;  %s4234_s16 = sld [smem:[#allocation28_spill]] }
 0x3cc   : > { %2300 = vrot.lane.b32.xlu2 %v2291_v46, %s3143_s17  ;;  %2463 = vmatpush.msrb.mxu1 %v2435_v10 }
 0x3ce   : > { %2464 = vmatpush.msrb.mxu1 %v2434_v33 }
 0x3d0   : > { %2465 = vmatpush.msrb.mxu1 %v2433_v62 }
 0x3d1   : > { %s2488_s8 = scalar_lea.hbm %s4234_s16, %s2696_s29  ;;  %s3068_s18 = scalar_lea.hbm %s4234_s16, 32 }
 0x3d2   : > { %2466 = vmatpush.msrb.mxu1 %v2432_v35  ;;  %s2491_s25 = sshll.u32 %s2488_s8, 4  ;;  %s2492_s25 = int_to_ptr.hbm [resolvable:$true] %s2491_s25 }
 0x3d3   : > { %s3062_s21 = sshra.s32 %s2492_s25, 4  ;;  %s3063_s21 = int_to_ptr.hbm [resolvable:$true] %s3062_s21 }
 0x3d4   : > { %s3064_s22 = scalar_lea.hbm %s3063_s21, 16  ;;  %p3069_p3 = scmp.lt.s32.totalorder %s3063_s21, %s4234_s16 }
 0x3d5   : > { %p3065_p0 = scmp.ne.s32.totalorder %s3063_s21, %s3064_s22  ;;  %p3070_p4 = scmp.lt.s32.totalorder %s3068_s18, %s3064_s22 }
 0x3d7   : > { %p3066_p1 = pnand %p3065_p0, %p3263_p5  ;;  %p3071_p7 = por %p3070_p4, %p3069_p3 }
 0x3d9   : > { %p3067_p2 = pneg %p3066_p1 }
 0x3db   : > { %p3072_p8 = pnand %p3071_p7, %p3067_p2 }
 0x41e   : > { %v2299_v15 = vpop.permute.xlu2 %2298 }
 0x41f   : > { %v2320_v5 = vsel %vm1694_vm2, %v2235_v8, %v2299_v15 }
 0x426   : > { %v2301_v53 = vpop.permute.xlu2 %2300 }
 0x427   : > { %v2321_v21 = vsel %vm1694_vm2, %v2289_v55, %v2301_v53 }
 0x432   : > { %v2315_v51 = vpop.permute.xlu0 %2314 }
 0x434   : > { %v2307_v12 = vpop.permute.xlu1 %2306 }
 0x435   : > { %v2323_v31 = vsel %vm2322_vm4, %v2320_v5, %v2307_v12 }
 0x436   : > { %v2325_v58 = vsel %vm1847_vm3, %v2323_v31, %v2315_v51 }
 0x437   : > { %2682 = vmatmul.msk.f32.vlgmr.msrb.gmra.mxu2 %vm626_vm0, %v2325_v58 }
 0x43c   : > { %v2317_v34 = vpop.permute.xlu1 %2316 }
 0x43d   : > { %v2309_v38 = vpop.permute.xlu0 %2308 }
 0x43e   : > { %v2324_v37 = vsel %vm2322_vm4, %v2321_v21, %v2309_v38 }
 0x43f   : > { %v2326_v52 = vsel %vm1847_vm3, %v2324_v37, %v2317_v34 }
 0x440   : > { %2683 = vmatmul.msk.f32.gmra.mxu2 %vm626_vm0, %v2326_v52 }
 0x445   : > { %v2418_v19 = vpop.f32.mrf.mxu3 }
 0x44e   : > { %v2421_v22 = vpop.f32.mrf.mxu3 }
 0x4ba   : > { %v2358_v63 = vpop.f32.mrf.mxu2 }
 0x4bb   : > { %v2359_v41 = vadd.f32 %v2831_v32, %v2358_v63 }
 0x4bd   : > { %2684 = vmatmul.msk.f32.vlgmr.msrb.gmra.mxu0 %vm626_vm0, %v2359_v41 }
 0x4c3   : > { %v2361_v43 = vpop.f32.mrf.mxu2 }
 0x4c4   : > { %v2362_v44 = vadd.f32 %v2831_v32, %v2361_v43 }
 0x4c6   : > { %2685 = vmatmul.msk.f32.gmra.mxu0 %vm626_vm0, %v2362_v44 }
 0x53a   : > { %v2395_v13 = vpop.f32.mrf.mxu0 }
 0x53b   : > { %v2419_v18 = vadd.f32 %v2418_v19, %v2395_v13 }
 0x53d   : > { %v2428_v2 = vadd.f32 %v2832_v29, %v2419_v18 }
 0x53f   : > { %v2430_v61 = vmax.f32 %v2428_v2, 0.0 }
 0x541   : > { %2688 = vmatmul.msk.f32.vlgmr.msrb.gmra.mxu1 %vm2444_vm5, %v2430_v61 }
 0x543   : > { %v2398_v27 = vpop.f32.mrf.mxu0 }
 0x544   : > { %v2422_v25 = vadd.f32 %v2421_v22, %v2398_v27 }
 0x546   : > { %v2429_v47 = vadd.f32 %v2832_v29, %v2422_v25 }
 0x548   : > { %v2431_v48 = vmax.f32 %v2429_v47, 0.0 }
 0x54a   : > { %2689 = vmatmul.msk.f32.gmra.mxu1 %vm2444_vm5, %v2431_v48 }
 0x5be   : > { %v2468_v30 = vpop.f32.mrf.mxu1 }
 0x5bf   : > { %v2469_v45 = vadd.f32 %v2833_v6, %v2468_v30 }
 0x5c1   : > { %2474 = vst.msk [vmem:[%s602_s15] sm:$0xff] %vm626_vm0, %v2469_v45 }
 0x5c7   : > { %v2471_v8 = vpop.f32.mrf.mxu1 }
 0x5c8   : > { %v2472_v3 = vadd.f32 %v2833_v6, %v2471_v8 }
 0x5ca   : > { %2475 = vst.msk [vmem:[%s602_s15 + $0x8] sm:$0xff] %vm626_vm0, %v2472_v3 }
 0x5cb   : > { %3075 = shalt.err (!%p3072_p8)
}
 0x5cc   : > { %s3144_s28 = smov 128  }
 0x5cd   : > { %2726 = dma.vmem_to_hbm [thread:$0]  (%p3263_p5), %s2490_s23, 256, %s2492_s25, %s2477_s27, %s3144_s28, %s3144_s28, %s3143_s17  }
 0x5ce PF: > { %s4235_s15 = sld [smem:[#allocation21_spill]] }
 0x5cf   : > { %s4236_s30 = sld [smem:[#allocation19_spill]] }
 0x5d4   : > { %p2763_p9 = scmp.ge.s32.totalorder %s4235_s15, 2 }
 0x5d5   : > { %s2506_s26 = sand.u32 1, %s4236_s30  }
 0x5d6   : > { %p2748_p10 = pnand %p2763_p9, %p3267_p6  ;;  %s2507_s24 = scalar_lea.sflag [#allocation4], %s2506_s26 }
 0x5d8   : > { %p2749_p11 = pneg %p2748_p10 }
 0x5da   : > { %3109 = dma.done.wait (%p2749_p11), %s2507_s24, 256  }
 0x5db   : > { %3111 = vsyncadd (%p2749_p11), %s2507_s24, 4294967040  ;;  %s4238_s21 = sld [smem:[#allocation22_spill]]  ;;  %s4241_s18 = smov %s3118_s19 }
 0x5dc   : > { %s4239_s22 = sld [smem:[#allocation20_spill]] }
 0x5dd   : > { %s4240_s20 = sld [smem:[#allocation23_spill]] }
 0x5e1   : > { %p29_p12 = scmp.ge.s32.totalorder %s4238_s21, 4  }
 0x5e2   : > { %s4242_s19 = smov %s4239_s22 }
 0x5e3   :  { %31 = sbr.rel (!%p29_p12) target bundleno = 11 (0xb), region = 143 }
 0x5e8   :  { %2513 = vsyncpa [#allocation3], 1 }
 0x5e9   :  { %2515 = vsyncpa [#allocation3 + $0x1], 1 }
 0x5ea   :  { %2516 = vsyncpa [#allocation6], 1 }
 0x5eb   :  { %2517 = vsyncpa [#allocation9], 1 }
 0x5ec   :  { %2518 = vsyncpa [#allocation12], 1 }
 0x5ed   :  { %2519 = vsyncpa [#allocation4], 1 }
 0x5ee   :  { %2521 = vsyncpa [#allocation4 + $0x1], 1 }

</bundles_post_ra>
